<compile_context>
chip_gen: v5e
topology: v5e:2x2
jax: 0.10.0
libtpu: 0.0.40
codegen_flags: <defaults>
</compile_context>

<pallas_src>
import numpy as np
import jax
import jax.numpy as jnp
from jax import lax
from jax.experimental import pallas as pl
from jax.experimental.pallas import tpu as pltpu


# ----------------------------------------------------------------------------
# Pallas kernel
#   x_ref     : (1, TQ, C)        query pixel tile (channels-last), f32
#   xw_ref    : (1, 4, HWp, C)    the four 2x2-pool window taps of x, MXU dtype
#   wth/wph   : (C, C//8)         theta / phi projection weights
#   wg        : (C, C//2)         g projection weights
#   wo        : (C//2, C)         output projection weights
#   gamma_ref : (1, 1) in SMEM    residual gate
#   out_ref   : (1, TQ, C)
#   phi_scr   : VMEM (HWp, C//8)  pooled phi (persists across query tiles)
#   g_scr     : VMEM (HWp, C//2)  pooled g   (persists across query tiles)
# ----------------------------------------------------------------------------
def _self_attention_kernel(x_ref, xw_ref, wth_ref, wph_ref, wg_ref, wo_ref,
                           gamma_ref, out_ref, phi_scr, g_scr):
    cdt = wth_ref.dtype                     # MXU compute dtype (bf16 or f32)
    q = pl.program_id(1)

    # ---- once per batch element: project phi / g, then 2x2 max-pool --------
    @pl.when(q == 0)
    def _():
        def proj_pool(w):                   # w: (C, Cp) -> (HWp, Cp)
            p = jnp.dot(xw_ref[0, 0], w, preferred_element_type=jnp.float32)
            for j in range(1, 4):           # max over the 4 window taps
                p = jnp.maximum(
                    p, jnp.dot(xw_ref[0, j], w,
                               preferred_element_type=jnp.float32))
            return p.astype(cdt)

        phi_scr[...] = proj_pool(wph_ref[...])
        g_scr[...] = proj_pool(wg_ref[...])

    # ---- per query tile -----------------------------------------------------
    xq = x_ref[0]                                                 # (TQ, C) f32
    theta = jnp.dot(xq.astype(cdt), wth_ref[...],
                    preferred_element_type=jnp.float32)           # (TQ, C8)

    # scores = theta @ phi^T (contract the small channel dim)
    s = lax.dot_general(theta.astype(cdt), phi_scr[...],
                        (((1,), (1,)), ((), ())),
                        preferred_element_type=jnp.float32)       # (TQ, HWp)

    m = jnp.max(s, axis=-1, keepdims=True)
    p = jnp.exp(s - m)
    beta = p * pl.reciprocal(jnp.sum(p, axis=-1, keepdims=True), approx=True)

    attn = jnp.dot(beta.astype(cdt), g_scr[...],
                   preferred_element_type=jnp.float32)            # (TQ, C2)
    o = jnp.dot(attn.astype(cdt), wo_ref[...],
                preferred_element_type=jnp.float32)               # (TQ, C)

    out_ref[0] = (gamma_ref[0, 0] * o + xq).astype(out_ref.dtype)


# ----------------------------------------------------------------------------
# Spectral norm (1 power iteration), matching SpectralNorm._update_u_v.
# ----------------------------------------------------------------------------
def _l2normalize(v, eps=1e-12):
    return v / (jnp.linalg.norm(v) + eps)


def _spectral_normalize(w_bar, u, v):
    # TODO(synk): the updated u/v power-iteration buffers are not written back
    # (functional inference-style approximation of PyTorch's in-place update).
    height = w_bar.shape[0]
    wm = w_bar.reshape(height, -1)
    v = _l2normalize(wm.T @ u)
    u = _l2normalize(wm @ v)
    sigma = u @ (wm @ v)
    return w_bar / sigma


# ----------------------------------------------------------------------------
# Wrapper: spectral norm, layout plumbing, pallas_call.
# ----------------------------------------------------------------------------
def self_attention(x_nchw, params, *, use_sn=True,
                   mxu_dtype=jnp.bfloat16, q_tile=128):
    N, C, H, W = x_nchw.shape
    assert C % 8 == 0 and H % 2 == 0 and W % 2 == 0
    C8, C2 = C // 8, C // 2
    HW = H * W
    Hp, Wp = H // 2, W // 2
    HWp = Hp * Wp

    # spectral-normalize the 1x1 conv weights (OIHW, k=1 -> (O, I))
    def weight(name):
        w = params[f"w_{name}_bar"]
        if use_sn:
            w = _spectral_normalize(w, params[f"u_{name}"], params[f"v_{name}"])
        return w.reshape(w.shape[0], w.shape[1])

    wth = weight("theta").T.astype(mxu_dtype)        # (C,  C8)
    wph = weight("phi").T.astype(mxu_dtype)          # (C,  C8)
    wg = weight("g").T.astype(mxu_dtype)             # (C,  C2)
    wo = weight("o").T.astype(mxu_dtype)             # (C2, C)
    gamma = params["gamma"].reshape(1, 1).astype(jnp.float32)

    # layout plumbing: pixel-major channels-last view + 2x2 window gather
    x_nhwc = jnp.transpose(x_nchw, (0, 2, 3, 1)).astype(jnp.float32)
    x_pix = x_nhwc.reshape(N, HW, C)                 # queries / residual (f32)
    xw = x_nhwc.reshape(N, Hp, 2, Wp, 2, C)
    xw = jnp.transpose(xw, (0, 2, 4, 1, 3, 5)).reshape(N, 4, HWp, C)
    xw = xw.astype(mxu_dtype)                        # pool window taps

    # query tiling
    if HW % q_tile == 0:
        tq = q_tile
    elif HW % 128 == 0:
        tq = 128
    else:
        tq = HW
    grid = (N, HW // tq)

    flops = 2 * N * (HW * C * (2 * C8 + C2)          # theta/phi/g projections
                     + HW * HWp * (C8 + C2)          # scores + attention
                     + HW * C2 * C)                  # output projection
    bytes_accessed = (x_pix.size * 4 + xw.size * xw.dtype.itemsize
                      + (wth.size + wph.size + wg.size + wo.size)
                      * jnp.dtype(mxu_dtype).itemsize
                      + N * HW * C * 4)
    cost = pl.CostEstimate(flops=int(flops), transcendentals=int(N * HW * HWp),
                           bytes_accessed=int(bytes_accessed))

    out_pix = pl.pallas_call(
        _self_attention_kernel,
        out_shape=jax.ShapeDtypeStruct((N, HW, C), jnp.float32),
        grid_spec=pltpu.PrefetchScalarGridSpec(
            num_scalar_prefetch=0,
            grid=grid,
            in_specs=[
                pl.BlockSpec((1, tq, C), lambda n, q: (n, q, 0)),         # x
                pl.BlockSpec((1, 4, HWp, C), lambda n, q: (n, 0, 0, 0)),  # xw
                pl.BlockSpec((C, C8), lambda n, q: (0, 0)),               # w_th
                pl.BlockSpec((C, C8), lambda n, q: (0, 0)),               # w_ph
                pl.BlockSpec((C, C2), lambda n, q: (0, 0)),               # w_g
                pl.BlockSpec((C2, C), lambda n, q: (0, 0)),               # w_o
                pl.BlockSpec(memory_space=pltpu.MemorySpace.SMEM),        # gamma
            ],
            out_specs=pl.BlockSpec((1, tq, C), lambda n, q: (n, q, 0)),
            scratch_shapes=[pltpu.VMEM((HWp, C8), mxu_dtype),
                            pltpu.VMEM((HWp, C2), mxu_dtype)],
        ),
        compiler_params=pltpu.CompilerParams(
            dimension_semantics=("parallel", "arbitrary"),
            vmem_limit_bytes=48 * 1024 * 1024),
        cost_estimate=cost,
    )(x_pix, xw, wth, wph, wg, wo, gamma)

    return jnp.transpose(out_pix.reshape(N, H, W, C), (0, 3, 1, 2))


# ----------------------------------------------------------------------------
# Pure-JAX NCHW reference mirroring the PyTorch forward, for verification.
# ----------------------------------------------------------------------------
def _ref_forward(x, w_theta, w_phi, w_g, w_o, gamma):
    N, C, H, W = x.shape
    C8, C2 = C // 8, C // 2

    def conv1x1(t, w):                               # w: (O, I)
        return jnp.einsum('nihw,oi->nohw', t, w)

    def maxpool2(t):
        n, c, h, w = t.shape
        return t.reshape(n, c, h // 2, 2, w // 2, 2).max(axis=(3, 5))

    theta = conv1x1(x, w_theta).reshape(N, C8, H * W)
    phi = maxpool2(conv1x1(x, w_phi)).reshape(N, C8, -1)
    g = maxpool2(conv1x1(x, w_g)).reshape(N, C2, -1)
    beta = jax.nn.softmax(jnp.einsum('nck,ncl->nkl', theta, phi), axis=-1)
    o = jnp.einsum('ncl,nkl->nck', g, beta).reshape(N, C2, H, W)
    o = conv1x1(o, w_o)
    return gamma.reshape(1, 1, 1, 1) * o + x


if __name__ == "__main__":
    N, C, H, W = 2, 32, 16, 16
    C8, C2 = C // 8, C // 2

    key = jax.random.PRNGKey(0)
    ks = jax.random.split(key, 13)

    def mk_w(k, o, i):
        return 0.1 * jax.random.normal(k, (o, i, 1, 1), jnp.float32)

    params = {
        "w_theta_bar": mk_w(ks[0], C8, C),
        "u_theta": jax.random.normal(ks[1], (C8,), jnp.float32),
        "v_theta": jax.random.normal(ks[2], (C,), jnp.float32),
        "w_phi_bar": mk_w(ks[3], C8, C),
        "u_phi": jax.random.normal(ks[4], (C8,), jnp.float32),
        "v_phi": jax.random.normal(ks[5], (C,), jnp.float32),
        "w_g_bar": mk_w(ks[6], C2, C),
        "u_g": jax.random.normal(ks[7], (C2,), jnp.float32),
        "v_g": jax.random.normal(ks[8], (C,), jnp.float32),
        "w_o_bar": mk_w(ks[9], C, C2),
        "u_o": jax.random.normal(ks[10], (C,), jnp.float32),
        "v_o": jax.random.normal(ks[11], (C2,), jnp.float32),
        "gamma": jnp.asarray([0.7], jnp.float32),   # nonzero to exercise attn
    }
    x = jax.random.normal(ks[12], (N, C, H, W), jnp.float32)

    fwd = jax.jit(self_attention)
    out = jax.block_until_ready(fwd(x, params))
    assert out.shape == (N, C, H, W)

    # verify against plain-JAX reference of the PyTorch forward
    wthn = _spectral_normalize(params["w_theta_bar"], params["u_theta"],
                               params["v_theta"])[:, :, 0, 0]
    wphn = _spectral_normalize(params["w_phi_bar"], params["u_phi"],
                               params["v_phi"])[:, :, 0, 0]
    wgn = _spectral_normalize(params["w_g_bar"], params["u_g"],
                              params["v_g"])[:, :, 0, 0]
    won = _spectral_normalize(params["w_o_bar"], params["u_o"],
                              params["v_o"])[:, :, 0, 0]
    ref = _ref_forward(x, wthn, wphn, wgn, won, params["gamma"])

    # bf16 MXU path with f32 accumulation -> loose tolerance
    np.testing.assert_allclose(np.asarray(out), np.asarray(ref),
                               rtol=2.5e-2, atol=2.5e-2)
    print("KERNEL_OK")
</pallas_src>

<mosaic_0001>
module attributes {stable_mosaic.version = 11 : i64} {
  func.func @_self_attention_kernel(%arg0: i32, %arg1: i32, %arg2: memref<1x128x32xf32, #tpu.memory_space<vmem>>, %arg3: memref<1x4x64x32xbf16, #tpu.memory_space<vmem>>, %arg4: memref<32x4xbf16, #tpu.memory_space<vmem>>, %arg5: memref<32x4xbf16, #tpu.memory_space<vmem>>, %arg6: memref<32x16xbf16, #tpu.memory_space<vmem>>, %arg7: memref<16x32xbf16, #tpu.memory_space<vmem>>, %arg8: memref<1x1xf32, #tpu.memory_space<smem>>, %arg9: memref<1x128x32xf32, #tpu.memory_space<vmem>>, %arg10: memref<64x4xbf16, #tpu.memory_space<vmem>>, %arg11: memref<64x16xbf16, #tpu.memory_space<vmem>>) attributes {dimension_semantics = [#tpu.dimension_semantics<parallel>, #tpu.dimension_semantics<arbitrary>], iteration_bounds = array<i64: 2, 2>, scalar_prefetch = 0 : i64, scratch_operands = 2 : i64, tpu.core_type = #tpu.core_type<tc>, window_params = [{transform_indices = @transform_0, window_bounds = array<i64: 1, 128, 32>}, {transform_indices = @transform_1, window_bounds = array<i64: 1, 4, 64, 32>}, {pipeline_mode = #tpu.pipeline_mode<synchronous>, transform_indices = @transform_2, window_bounds = array<i64: 32, 4>}, {pipeline_mode = #tpu.pipeline_mode<synchronous>, transform_indices = @transform_3, window_bounds = array<i64: 32, 4>}, {pipeline_mode = #tpu.pipeline_mode<synchronous>, transform_indices = @transform_4, window_bounds = array<i64: 32, 16>}, {pipeline_mode = #tpu.pipeline_mode<synchronous>, transform_indices = @transform_5, window_bounds = array<i64: 16, 32>}, {transform_indices = @transform_6, window_bounds = array<i64: 1, 1>}, {transform_indices = @transform_7, window_bounds = array<i64: 1, 128, 32>}]} {
    %c0_i32 = arith.constant 0 : i32
    %0 = arith.cmpi eq, %arg1, %c0_i32 : i32
    %1 = arith.extui %0 : i1 to i32
    %c0_i32_0 = arith.constant 0 : i32
    %2 = arith.cmpi ne, %1, %c0_i32_0 : i32
    scf.if %2 {
      %c0_21 = arith.constant 0 : index
      %c0_22 = arith.constant 0 : index
      %34 = vector.load %arg5[%c0_21, %c0_22] : memref<32x4xbf16, #tpu.memory_space<vmem>>, vector<32x4xbf16>
      %c0_23 = arith.constant 0 : index
      %c0_24 = arith.constant 0 : index
      %c0_25 = arith.constant 0 : index
      %c0_26 = arith.constant 0 : index
      %35 = vector.load %arg3[%c0_23, %c0_24, %c0_25, %c0_26] : memref<1x4x64x32xbf16, #tpu.memory_space<vmem>>, vector<1x1x64x32xbf16>
      %36 = vector.shape_cast %35 : vector<1x1x64x32xbf16> to vector<64x32xbf16>
      %cst_27 = arith.constant dense<0.000000e+00> : vector<64x4xf32>
      %37 = tpu.matmul %36, %34, %cst_27 {dimension_numbers = #tpu.dot_dimension_numbers<[1], [0], [0], [1], [0, 0, 1, 1], [], []>} : vector<64x32xbf16>, vector<32x4xbf16>, vector<64x4xf32> -> vector<64x4xf32>
      %c0_28 = arith.constant 0 : index
      %c1 = arith.constant 1 : index
      %c0_29 = arith.constant 0 : index
      %c0_30 = arith.constant 0 : index
      %38 = vector.load %arg3[%c0_28, %c1, %c0_29, %c0_30] : memref<1x4x64x32xbf16, #tpu.memory_space<vmem>>, vector<1x1x64x32xbf16>
      %39 = vector.shape_cast %38 : vector<1x1x64x32xbf16> to vector<64x32xbf16>
      %cst_31 = arith.constant dense<0.000000e+00> : vector<64x4xf32>
      %40 = tpu.matmul %39, %34, %cst_31 {dimension_numbers = #tpu.dot_dimension_numbers<[1], [0], [0], [1], [0, 0, 1, 1], [], []>} : vector<64x32xbf16>, vector<32x4xbf16>, vector<64x4xf32> -> vector<64x4xf32>
      %41 = arith.maximumf %37, %40 : vector<64x4xf32>
      %c0_32 = arith.constant 0 : index
      %c2 = arith.constant 2 : index
      %c0_33 = arith.constant 0 : index
      %c0_34 = arith.constant 0 : index
      %42 = vector.load %arg3[%c0_32, %c2, %c0_33, %c0_34] : memref<1x4x64x32xbf16, #tpu.memory_space<vmem>>, vector<1x1x64x32xbf16>
      %43 = vector.shape_cast %42 : vector<1x1x64x32xbf16> to vector<64x32xbf16>
      %cst_35 = arith.constant dense<0.000000e+00> : vector<64x4xf32>
      %44 = tpu.matmul %43, %34, %cst_35 {dimension_numbers = #tpu.dot_dimension_numbers<[1], [0], [0], [1], [0, 0, 1, 1], [], []>} : vector<64x32xbf16>, vector<32x4xbf16>, vector<64x4xf32> -> vector<64x4xf32>
      %45 = arith.maximumf %41, %44 : vector<64x4xf32>
      %c0_36 = arith.constant 0 : index
      %c3 = arith.constant 3 : index
      %c0_37 = arith.constant 0 : index
      %c0_38 = arith.constant 0 : index
      %46 = vector.load %arg3[%c0_36, %c3, %c0_37, %c0_38] : memref<1x4x64x32xbf16, #tpu.memory_space<vmem>>, vector<1x1x64x32xbf16>
      %47 = vector.shape_cast %46 : vector<1x1x64x32xbf16> to vector<64x32xbf16>
      %cst_39 = arith.constant dense<0.000000e+00> : vector<64x4xf32>
      %48 = tpu.matmul %47, %34, %cst_39 {dimension_numbers = #tpu.dot_dimension_numbers<[1], [0], [0], [1], [0, 0, 1, 1], [], []>} : vector<64x32xbf16>, vector<32x4xbf16>, vector<64x4xf32> -> vector<64x4xf32>
      %49 = arith.maximumf %45, %48 : vector<64x4xf32>
      %50 = arith.truncf %49 : vector<64x4xf32> to vector<64x4xbf16>
      %c0_40 = arith.constant 0 : index
      %c0_41 = arith.constant 0 : index
      %51 = vector.load %arg10[%c0_40, %c0_41] : memref<64x4xbf16, #tpu.memory_space<vmem>>, vector<64x4xbf16>
      tpu.vector_store %arg10[%c0_40, %c0_41], %50 {strides = array<i32>} : memref<64x4xbf16, #tpu.memory_space<vmem>>, vector<64x4xbf16>,
      %c0_42 = arith.constant 0 : index
      %c0_43 = arith.constant 0 : index
      %52 = vector.load %arg6[%c0_42, %c0_43] : memref<32x16xbf16, #tpu.memory_space<vmem>>, vector<32x16xbf16>
      %c0_44 = arith.constant 0 : index
      %c0_45 = arith.constant 0 : index
      %c0_46 = arith.constant 0 : index
      %c0_47 = arith.constant 0 : index
      %53 = vector.load %arg3[%c0_44, %c0_45, %c0_46, %c0_47] : memref<1x4x64x32xbf16, #tpu.memory_space<vmem>>, vector<1x1x64x32xbf16>
      %54 = vector.shape_cast %53 : vector<1x1x64x32xbf16> to vector<64x32xbf16>
      %cst_48 = arith.constant dense<0.000000e+00> : vector<64x16xf32>
      %55 = tpu.matmul %54, %52, %cst_48 {dimension_numbers = #tpu.dot_dimension_numbers<[1], [0], [0], [1], [0, 0, 1, 1], [], []>} : vector<64x32xbf16>, vector<32x16xbf16>, vector<64x16xf32> -> vector<64x16xf32>
      %c0_49 = arith.constant 0 : index
      %c1_50 = arith.constant 1 : index
      %c0_51 = arith.constant 0 : index
      %c0_52 = arith.constant 0 : index
      %56 = vector.load %arg3[%c0_49, %c1_50, %c0_51, %c0_52] : memref<1x4x64x32xbf16, #tpu.memory_space<vmem>>, vector<1x1x64x32xbf16>
      %57 = vector.shape_cast %56 : vector<1x1x64x32xbf16> to vector<64x32xbf16>
      %cst_53 = arith.constant dense<0.000000e+00> : vector<64x16xf32>
      %58 = tpu.matmul %57, %52, %cst_53 {dimension_numbers = #tpu.dot_dimension_numbers<[1], [0], [0], [1], [0, 0, 1, 1], [], []>} : vector<64x32xbf16>, vector<32x16xbf16>, vector<64x16xf32> -> vector<64x16xf32>
      %59 = arith.maximumf %55, %58 : vector<64x16xf32>
      %c0_54 = arith.constant 0 : index
      %c2_55 = arith.constant 2 : index
      %c0_56 = arith.constant 0 : index
      %c0_57 = arith.constant 0 : index
      %60 = vector.load %arg3[%c0_54, %c2_55, %c0_56, %c0_57] : memref<1x4x64x32xbf16, #tpu.memory_space<vmem>>, vector<1x1x64x32xbf16>
      %61 = vector.shape_cast %60 : vector<1x1x64x32xbf16> to vector<64x32xbf16>
      %cst_58 = arith.constant dense<0.000000e+00> : vector<64x16xf32>
      %62 = tpu.matmul %61, %52, %cst_58 {dimension_numbers = #tpu.dot_dimension_numbers<[1], [0], [0], [1], [0, 0, 1, 1], [], []>} : vector<64x32xbf16>, vector<32x16xbf16>, vector<64x16xf32> -> vector<64x16xf32>
      %63 = arith.maximumf %59, %62 : vector<64x16xf32>
      %c0_59 = arith.constant 0 : index
      %c3_60 = arith.constant 3 : index
      %c0_61 = arith.constant 0 : index
      %c0_62 = arith.constant 0 : index
      %64 = vector.load %arg3[%c0_59, %c3_60, %c0_61, %c0_62] : memref<1x4x64x32xbf16, #tpu.memory_space<vmem>>, vector<1x1x64x32xbf16>
      %65 = vector.shape_cast %64 : vector<1x1x64x32xbf16> to vector<64x32xbf16>
      %cst_63 = arith.constant dense<0.000000e+00> : vector<64x16xf32>
      %66 = tpu.matmul %65, %52, %cst_63 {dimension_numbers = #tpu.dot_dimension_numbers<[1], [0], [0], [1], [0, 0, 1, 1], [], []>} : vector<64x32xbf16>, vector<32x16xbf16>, vector<64x16xf32> -> vector<64x16xf32>
      %67 = arith.maximumf %63, %66 : vector<64x16xf32>
      %68 = arith.truncf %67 : vector<64x16xf32> to vector<64x16xbf16>
      %c0_64 = arith.constant 0 : index
      %c0_65 = arith.constant 0 : index
      %69 = vector.load %arg11[%c0_64, %c0_65] : memref<64x16xbf16, #tpu.memory_space<vmem>>, vector<64x16xbf16>
      tpu.vector_store %arg11[%c0_64, %c0_65], %68 {strides = array<i32>} : memref<64x16xbf16, #tpu.memory_space<vmem>>, vector<64x16xbf16>,
    } else {
    }
    %c0 = arith.constant 0 : index
    %c0_1 = arith.constant 0 : index
    %c0_2 = arith.constant 0 : index
    %3 = vector.load %arg2[%c0, %c0_1, %c0_2] : memref<1x128x32xf32, #tpu.memory_space<vmem>>, vector<1x128x32xf32>
    %4 = vector.shape_cast %3 : vector<1x128x32xf32> to vector<128x32xf32>
    %5 = arith.truncf %4 : vector<128x32xf32> to vector<128x32xbf16>
    %c0_3 = arith.constant 0 : index
    %c0_4 = arith.constant 0 : index
    %6 = vector.load %arg4[%c0_3, %c0_4] : memref<32x4xbf16, #tpu.memory_space<vmem>>, vector<32x4xbf16>
    %cst = arith.constant dense<0.000000e+00> : vector<128x4xf32>
    %7 = tpu.matmul %5, %6, %cst {dimension_numbers = #tpu.dot_dimension_numbers<[1], [0], [0], [1], [0, 0, 1, 1], [], []>} : vector<128x32xbf16>, vector<32x4xbf16>, vector<128x4xf32> -> vector<128x4xf32>
    %8 = arith.truncf %7 : vector<128x4xf32> to vector<128x4xbf16>
    %c0_5 = arith.constant 0 : index
    %c0_6 = arith.constant 0 : index
    %9 = vector.load %arg10[%c0_5, %c0_6] : memref<64x4xbf16, #tpu.memory_space<vmem>>, vector<64x4xbf16>
    %cst_7 = arith.constant dense<0.000000e+00> : vector<128x64xf32>
    %10 = tpu.matmul %8, %9, %cst_7 {dimension_numbers = #tpu.dot_dimension_numbers<[1], [1], [0], [0], [0, 0, 1, 0], [], []>} : vector<128x4xbf16>, vector<64x4xbf16>, vector<128x64xf32> -> vector<128x64xf32>
    %cst_8 = arith.constant dense<0xFF800000> : vector<128xf32>
    %11 = vector.multi_reduction <maximumf>, %10, %cst_8 [1] : vector<128x64xf32> to vector<128xf32>
    %12 = vector.shape_cast %11 : vector<128xf32> to vector<128x1xf32>
    %13 = vector.broadcast %12 : vector<128x1xf32> to vector<128x64xf32>
    %14 = arith.subf %10, %13 : vector<128x64xf32>
    %15 = math.exp %14 : vector<128x64xf32>
    %cst_9 = arith.constant dense<0.000000e+00> : vector<128xf32>
    %16 = vector.multi_reduction <add>, %15, %cst_9 [1] : vector<128x64xf32> to vector<128xf32>
    %17 = vector.shape_cast %16 : vector<128xf32> to vector<128x1xf32>
    %18 = tpu.reciprocal %17 {approx = true} : vector<128x1xf32> -> vector<128x1xf32>
    %19 = vector.broadcast %18 : vector<128x1xf32> to vector<128x64xf32>
    %20 = arith.mulf %15, %19 : vector<128x64xf32>
    %21 = arith.truncf %20 : vector<128x64xf32> to vector<128x64xbf16>
    %c0_10 = arith.constant 0 : index
    %c0_11 = arith.constant 0 : index
    %22 = vector.load %arg11[%c0_10, %c0_11] : memref<64x16xbf16, #tpu.memory_space<vmem>>, vector<64x16xbf16>
    %cst_12 = arith.constant dense<0.000000e+00> : vector<128x16xf32>
    %23 = tpu.matmul %21, %22, %cst_12 {dimension_numbers = #tpu.dot_dimension_numbers<[1], [0], [0], [1], [0, 0, 1, 1], [], []>} : vector<128x64xbf16>, vector<64x16xbf16>, vector<128x16xf32> -> vector<128x16xf32>
    %24 = arith.truncf %23 : vector<128x16xf32> to vector<128x16xbf16>
    %c0_13 = arith.constant 0 : index
    %c0_14 = arith.constant 0 : index
    %25 = vector.load %arg7[%c0_13, %c0_14] : memref<16x32xbf16, #tpu.memory_space<vmem>>, vector<16x32xbf16>
    %cst_15 = arith.constant dense<0.000000e+00> : vector<128x32xf32>
    %26 = tpu.matmul %24, %25, %cst_15 {dimension_numbers = #tpu.dot_dimension_numbers<[1], [0], [0], [1], [0, 0, 1, 1], [], []>} : vector<128x16xbf16>, vector<16x32xbf16>, vector<128x32xf32> -> vector<128x32xf32>
    %c0_16 = arith.constant 0 : index
    %c0_17 = arith.constant 0 : index
    %27 = memref.load %arg8[%c0_16, %c0_17] : memref<1x1xf32, #tpu.memory_space<smem>>
    %28 = vector.broadcast %27 : f32 to vector<128x32xf32>
    %29 = arith.mulf %28, %26 : vector<128x32xf32>
    %30 = arith.addf %29, %4 : vector<128x32xf32>
    %c0_18 = arith.constant 0 : index
    %c0_19 = arith.constant 0 : index
    %c0_20 = arith.constant 0 : index
    %31 = vector.load %arg9[%c0_18, %c0_19, %c0_20] : memref<1x128x32xf32, #tpu.memory_space<vmem>>, vector<1x128x32xf32>
    %32 = vector.shape_cast %31 : vector<1x128x32xf32> to vector<128x32xf32>
    %33 = vector.shape_cast %30 : vector<128x32xf32> to vector<1x128x32xf32>
    tpu.vector_store %arg9[%c0_18, %c0_19, %c0_20], %33 {strides = array<i32>} : memref<1x128x32xf32, #tpu.memory_space<vmem>>, vector<1x128x32xf32>,
    return
  }
  func.func @transform_0(%arg0: i32, %arg1: i32) -> (i32, i32, i32) {
    %c0_i32 = arith.constant 0 : i32
    %c0_i32_0 = arith.constant 0 : i32
    return %arg0, %arg1, %c0_i32 : i32, i32, i32
  }
  func.func @transform_1(%arg0: i32, %arg1: i32) -> (i32, i32, i32, i32) {
    %c0_i32 = arith.constant 0 : i32
    %c0_i32_0 = arith.constant 0 : i32
    %c0_i32_1 = arith.constant 0 : i32
    %c0_i32_2 = arith.constant 0 : i32
    return %arg0, %c0_i32, %c0_i32_0, %c0_i32_1 : i32, i32, i32, i32
  }
  func.func @transform_2(%arg0: i32, %arg1: i32) -> (i32, i32) {
    %c0_i32 = arith.constant 0 : i32
    %c0_i32_0 = arith.constant 0 : i32
    %c0_i32_1 = arith.constant 0 : i32
    return %c0_i32, %c0_i32_0 : i32, i32
  }
  func.func @transform_3(%arg0: i32, %arg1: i32) -> (i32, i32) {
    %c0_i32 = arith.constant 0 : i32
    %c0_i32_0 = arith.constant 0 : i32
    %c0_i32_1 = arith.constant 0 : i32
    return %c0_i32, %c0_i32_0 : i32, i32
  }
  func.func @transform_4(%arg0: i32, %arg1: i32) -> (i32, i32) {
    %c0_i32 = arith.constant 0 : i32
    %c0_i32_0 = arith.constant 0 : i32
    %c0_i32_1 = arith.constant 0 : i32
    return %c0_i32, %c0_i32_0 : i32, i32
  }
  func.func @transform_5(%arg0: i32, %arg1: i32) -> (i32, i32) {
    %c0_i32 = arith.constant 0 : i32
    %c0_i32_0 = arith.constant 0 : i32
    %c0_i32_1 = arith.constant 0 : i32
    return %c0_i32, %c0_i32_0 : i32, i32
  }
  func.func @transform_6(%arg0: i32, %arg1: i32) -> (i32, i32) {
    %c0_i32 = arith.constant 0 : i32
    %c0_i32_0 = arith.constant 0 : i32
    %c0_i32_1 = arith.constant 0 : i32
    return %c0_i32, %c0_i32_0 : i32, i32
  }
  func.func @transform_7(%arg0: i32, %arg1: i32) -> (i32, i32, i32) {
    %c0_i32 = arith.constant 0 : i32
    %c0_i32_0 = arith.constant 0 : i32
    return %arg0, %arg1, %c0_i32 : i32, i32, i32
  }
}

</mosaic_0001>

<bundles_post_ra>
// kernel: self_attention.1
= control target key start
LH: loop header
LB: loop body
LE: loop exit
PB: predicated region body
PF: predicated region fallthrough
CT: control target
= control target key end

     0   :  { %s2961_s0 = inlined_call_operand.vmem [shape: f32[2,256,32], index: 0, kind: input, shape index: {}]   ;;  %s2962_s1 = inlined_call_operand.vmem [shape: bf16[2,4,64,32], index: 1, kind: input, shape index: {}]   ;;  %s2963_s2 = inlined_call_operand.vmem [shape: bf16[32,4], index: 2, kind: input, shape index: {}]   ;;  %s2964_s3 = inlined_call_operand.vmem [shape: bf16[32,4], index: 3, kind: input, shape index: {}]   ;;  %s2965_s4 = inlined_call_operand.vmem [shape: bf16[32,16], index: 4, kind: input, shape index: {}]   ;;  %s2966_s5 = inlined_call_operand.vmem [shape: bf16[16,32], index: 5, kind: input, shape index: {}]   ;;  %s2967_s6 = inlined_call_operand.<no memory space> [shape: f32[1,1], index: 6, kind: input, shape index: {}]   ;;  %s2968_s7 = inlined_call_operand.hbm [shape: f32[2,256,32], index: 7, kind: output, shape index: {}]  }
   0x1   :  { %12 = sst [smem:[#allocation4]] %s2967_s6 }
   0x2   :  { %13 = vsyncpa [#allocation6], 0 }
   0x3   :  { %15 = vsyncpa [#allocation6 + $0x1], 0  ;;  %s2426_s26 = smov 0   ;;  %s2428_s27 = smov 0  }
   0x4   :  { %s2430_s28 = smov 0   ;;  %s2432_s29 = smov 0  }
   0x5   :  { %s2434_s30 = smov 0   ;;  %s2436_s8 = smov 0  }
   0x6   :  { %s2438_s9 = smov 0   ;;  %s2440_s10 = smov 0  }
   0x7 LB: > { %2975 = sst [smem:[#allocation8_spill]] %s2359_s28  ;;  %s1782_s6 = sadd.s32 4294967295, %s2379_s10   ;;  %s2379_s10 = sphi %s2440_s10, %s21_s10   ;;  %s2375_s9 = sphi %s2438_s9, %s2989_s9   ;;  %s2371_s8 = sphi %s2436_s8, %s2988_s8   ;;  %s2367_s30 = sphi %s2434_s30, %s2987_s30   ;;  %s2363_s29 = sphi %s2432_s29, %s2986_s29   ;;  %s2359_s28 = sphi %s2430_s28, %s2985_s28   ;;  %s2355_s27 = sphi %s2428_s27, %s2991_s27   ;;  %s2351_s26 = sphi %s2426_s26, %s2990_s26  }
   0x8   : > { %2976 = sst [smem:[#allocation9_spill]] %s2371_s8  ;;  %s1783_s11 = sadd.s32 4294967294, %s2379_s10  }
   0x9   : > { %2977 = sst [smem:[#allocation10_spill]] %s2375_s9  ;;  %s30_s12 = sadd.s32 1, %s2371_s8 }
   0xa   : > { %p31_p0 = scmp.ge.s32.totalorder %s30_s12, 2  ;;  %s33_s13 = sadd.s32 1, %s2375_s9 }
   0xb   : > { %p211_p1 = scmp.ne.s32.totalorder %s2359_s28, %s2355_s27  ;;  %p212_p2 = scmp.eq.s32.totalorder %s1782_s6, 3 }
   0xc   : > { %s2993_s12 = smov (%p31_p0, %s30_s12), 0  ;;  %s2995_s13 = smov (!%p31_p0, %s33_s13), %s2375_s9 }
   0xd   : > { %2978 = sst [smem:[#allocation11_spill]] %s2993_s12  ;;  %s197_s14 = ssub.s32 %s2371_s8, %s2993_s12 }
   0xe   : > { %p2477_p3 = por %p212_p2, %p211_p1  ;;  %p35_p4 = scmp.ge.s32.totalorder %s2995_s13, 2 }
   0xf   : > { %p217_p5 = scmp.ne.s32.totalorder %s2355_s27, %s2351_s26  ;;  %p218_p6 = scmp.eq.s32.totalorder %s1783_s11, 3 }
  0x10   : > { %p1786_p7 = scmp.ge.s32.totalorder %s2379_s10, 1  ;;  %s2997_s13 = smov (%p35_p4, %s2995_s13), 0 }
  0x11   : > { %2980 = sst [smem:[#allocation12_spill]] %s2997_s13  ;;  %p2486_p8 = por %p218_p6, %p217_p5 }
  0x12   : > { %p272_p9 = scmp.lt.s32.totalorder %s2379_s10, 5  ;;  %s196_s17 = ssub.s32 %s2375_s9, %s2997_s13 }
  0x13   : > { %s201_s18 = sadd.s32 1, %s2359_s28  ;;  %s198_s19 = sor.u32 %s197_s14, %s196_s17 }
  0x14   : > { %p273_p10 = pnand %p1786_p7, %p272_p9  ;;  %p199_p11 = scmp.eq.s32.totalorder %s198_s19, 0 }
  0x15   : > { %s2973_s21 = sand.u32 (!%p273_p10), 1, %s2355_s27   ;;  %s2499_s22 = sshll.u32 (!%p273_p10), %s2363_s29, 4 }
  0x16   : > { %s2495_s20 = scalar_select %p199_p11, %s2359_s28, %s201_s18  }
  0x17   : > { %276 = sbr.rel (%p273_p10) target bundleno = 1305 (0x519), region = 48  ;;  %s1787_s23 = sshll.u32 (!%p273_p10), %s2973_s21, 7 }
  0x18   : > { %2982 = sst [smem:[#allocation13_spill]] %s2495_s20  ;;  %p314_p12 = scmp.lt.s32.totalorder (!%p273_p10), %s2367_s30, 1 }
  0x19   : > { %p316_p13 = scmp.lt.s32.totalorder (!%p273_p10), %s2499_s22, 31  ;;  %s2517_s20 = scalar_lea.vmem (!%p273_p10), [#allocation5], %s1787_s23 }
  0x1a   : > { %p1793_p0 = scmp.ne.s32.totalorder (!%p273_p10), %s2363_s29, 0 }
  0x1c   : > { %s315_s24 = scalar_select %p314_p12, %s2367_s30, 1 }
  0x1d   : > { %s317_s25 = scalar_select %p316_p13, %s2499_s22, 31 }
  0x1e   : > { %s1789_s6 = sshll.u32 %s315_s24, 5  ;;  %s2100_s11 = sshll.u32 %s315_s24, 7 }
  0x1f   : > { %s319_s14 = sadd.s32 %s1789_s6, %s317_s25  ;;  %s2510_s19 = scalar_lea.vmem %s2962_s1, %s2100_s11 }
  0x20   : > { %s1790_s13 = sshll.u32 %s319_s14, 3  ;;  %333 = sbr.rel (%p1793_p0) target bundleno = 305 (0x131), region = 52 }
  0x21   : > { %s2515_s8 = scalar_lea.vmem %s2961_s0, %s1790_s13 }
  0x25   : > { %v2102_v0 = vld [vmem:[%s2964_s3 + $0x8] sm:$0xff]  ;;  %v2101_v1 = vld [vmem:[%s2964_s3] sm:$0xff]  ;;  %vm378_vm0 = vcmask 261120   ;;  %v2105_v12 = vld [vmem:[%s2510_s19 + $0x10] sm:$0xff]  ;;  %vm662_vm1 = vcmask 27648   ;;  %vm995_vm2 = vcmask 125952  }
  0x26   : > { %397 = vmatpush.bf16.msra.mxu0 %v2102_v0  ;;  %467 = vmatpush.bf16.msra.mxu1 %v2102_v0  ;;  %v2120_v2 = vld [vmem:[%s2965_s4 + $0x8] sm:$0xff]  ;;  %v2103_v3 = vld [vmem:[%s2510_s19] sm:$0xff]  ;;  %v2109_v13 = vld [vmem:[%s2510_s19 + $0x30] sm:$0xff] }
  0x27   : > { %545 = vmatpush.bf16.msra.mxu2 %v2102_v0  ;;  %623 = vmatpush.bf16.msra.mxu3 %v2102_v0  ;;  %v2107_v4 = vld [vmem:[%s2510_s19 + $0x20] sm:$0xff]  ;;  %v2104_v8 = vld [vmem:[%s2510_s19 + $0x8] sm:$0xff]  ;;  %v2113_v14 = vld [vmem:[%s2510_s19 + $0x50] sm:$0xff] }
  0x28   : > { %v2111_v5 = vld [vmem:[%s2510_s19 + $0x40] sm:$0xff]  ;;  %v2108_v9 = vld [vmem:[%s2510_s19 + $0x28] sm:$0xff]  ;;  %v2117_v15 = vld [vmem:[%s2510_s19 + $0x70] sm:$0xff] }
  0x29   : > { %v2115_v6 = vld [vmem:[%s2510_s19 + $0x60] sm:$0xff]  ;;  %v2112_v10 = vld [vmem:[%s2510_s19 + $0x48] sm:$0xff]  ;;  %v2106_v16 = vld [vmem:[%s2510_s19 + $0x18] sm:$0xff] }
  0x2a   : > { %398 = vmatpush.bf16.msra.mxu0 %v2101_v1  ;;  %468 = vmatpush.bf16.msra.mxu1 %v2101_v1  ;;  %v2119_v7 = vld [vmem:[%s2965_s4] sm:$0xff]  ;;  %v2116_v11 = vld [vmem:[%s2510_s19 + $0x68] sm:$0xff]  ;;  %v2110_v17 = vld [vmem:[%s2510_s19 + $0x38] sm:$0xff] }
  0x2b   : > { %546 = vmatpush.bf16.msra.mxu2 %v2101_v1  ;;  %624 = vmatpush.bf16.msra.mxu3 %v2101_v1  ;;  %v2114_v18 = vld [vmem:[%s2510_s19 + $0x58] sm:$0xff]  ;;  %v2121_v20 = vld [vmem:[%s2510_s19] sm:$0xff]  ;;  %v2122_v24 = vld [vmem:[%s2510_s19 + $0x8] sm:$0xff] }
  0x2c   : > { %v2118_v19 = vld [vmem:[%s2510_s19 + $0x78] sm:$0xff]  ;;  %v2125_v21 = vld [vmem:[%s2510_s19 + $0x20] sm:$0xff]  ;;  %v2126_v25 = vld [vmem:[%s2510_s19 + $0x28] sm:$0xff] }
  0x2d   : > { %1818 = vmatmul.msk.bf16.vlgmr.msra.gmra.mxu0 %vm378_vm0, %v2103_v3  ;;  %1846 = vmatmul.msk.bf16.vlgmr.msra.gmra.mxu1 %vm378_vm0, %v2107_v4  ;;  %v2129_v22 = vld [vmem:[%s2510_s19 + $0x40] sm:$0xff]  ;;  %v2130_v26 = vld [vmem:[%s2510_s19 + $0x48] sm:$0xff]  ;;  %v2123_v28 = vld [vmem:[%s2510_s19 + $0x10] sm:$0xff] }
  0x2e   : > { %1874 = vmatmul.msk.bf16.vlgmr.msra.gmra.mxu2 %vm378_vm0, %v2111_v5  ;;  %1902 = vmatmul.msk.bf16.vlgmr.msra.gmra.mxu3 %vm378_vm0, %v2115_v6  ;;  %v2133_v23 = vld [vmem:[%s2510_s19 + $0x60] sm:$0xff]  ;;  %v2134_v27 = vld [vmem:[%s2510_s19 + $0x68] sm:$0xff]  ;;  %v2127_v29 = vld [vmem:[%s2510_s19 + $0x30] sm:$0xff] }
  0x2f   : > { %879 = vmatpush.bf16.msrb.mxu2 %v2120_v2  ;;  %956 = vmatpush.bf16.msrb.mxu3 %v2120_v2  ;;  %v2131_v30 = vld [vmem:[%s2510_s19 + $0x50] sm:$0xff]  ;;  %v2124_v32 = vld [vmem:[%s2510_s19 + $0x18] sm:$0xff] }
  0x30   : > { %733 = vmatpush.bf16.msrb.mxu0 %v2120_v2  ;;  %802 = vmatpush.bf16.msrb.mxu1 %v2120_v2  ;;  %v2135_v31 = vld [vmem:[%s2510_s19 + $0x70] sm:$0xff]  ;;  %v2128_v33 = vld [vmem:[%s2510_s19 + $0x38] sm:$0xff] }
  0x31   : > { %v2132_v34 = vld [vmem:[%s2510_s19 + $0x58] sm:$0xff] }
  0x32   : > { %v2136_v35 = vld [vmem:[%s2510_s19 + $0x78] sm:$0xff] }
  0x33   : > { %880 = vmatpush.bf16.msrb.mxu2 %v2119_v7  ;;  %957 = vmatpush.bf16.msrb.mxu3 %v2119_v7 }
  0x34   : > { %734 = vmatpush.bf16.msrb.mxu0 %v2119_v7  ;;  %803 = vmatpush.bf16.msrb.mxu1 %v2119_v7 }
  0x3d   : > { %1819 = vmatmul.msk.bf16.gmra.mxu0 %vm378_vm0, %v2104_v8  ;;  %1847 = vmatmul.msk.bf16.gmra.mxu1 %vm378_vm0, %v2108_v9 }
  0x3e   : > { %1875 = vmatmul.msk.bf16.gmra.mxu2 %vm378_vm0, %v2112_v10  ;;  %1903 = vmatmul.msk.bf16.gmra.mxu3 %vm378_vm0, %v2116_v11 }
  0x4d   : > { %1820 = vmatmul.msk.bf16.gmra.mxu0 %vm378_vm0, %v2105_v12  ;;  %1848 = vmatmul.msk.bf16.gmra.mxu1 %vm378_vm0, %v2109_v13 }
  0x4e   : > { %1876 = vmatmul.msk.bf16.gmra.mxu2 %vm378_vm0, %v2113_v14  ;;  %1904 = vmatmul.msk.bf16.gmra.mxu3 %vm378_vm0, %v2117_v15 }
  0x5d   : > { %1821 = vmatmul.msk.bf16.gmra.mxu0 %vm378_vm0, %v2106_v16  ;;  %1849 = vmatmul.msk.bf16.gmra.mxu1 %vm378_vm0, %v2110_v17 }
  0x5e   : > { %1877 = vmatmul.msk.bf16.gmra.mxu2 %vm378_vm0, %v2114_v18  ;;  %1905 = vmatmul.msk.bf16.gmra.mxu3 %vm378_vm0, %v2118_v19 }
  0x6d   : > { %1930 = vmatmul.msk.bf16.vlgmr.msrb.gmra.mxu0 %vm378_vm0, %v2121_v20  ;;  %1958 = vmatmul.msk.bf16.vlgmr.msrb.gmra.mxu1 %vm378_vm0, %v2125_v21 }
  0x6e   : > { %1986 = vmatmul.msk.bf16.vlgmr.msrb.gmra.mxu2 %vm378_vm0, %v2129_v22  ;;  %2014 = vmatmul.msk.bf16.vlgmr.msrb.gmra.mxu3 %vm378_vm0, %v2133_v23 }
  0x7d   : > { %1931 = vmatmul.msk.bf16.gmra.mxu0 %vm378_vm0, %v2122_v24  ;;  %1959 = vmatmul.msk.bf16.gmra.mxu1 %vm378_vm0, %v2126_v25 }
  0x7e   : > { %1987 = vmatmul.msk.bf16.gmra.mxu2 %vm378_vm0, %v2130_v26  ;;  %2015 = vmatmul.msk.bf16.gmra.mxu3 %vm378_vm0, %v2134_v27 }
  0x8d   : > { %1932 = vmatmul.msk.bf16.gmra.mxu0 %vm378_vm0, %v2123_v28  ;;  %1960 = vmatmul.msk.bf16.gmra.mxu1 %vm378_vm0, %v2127_v29 }
  0x8e   : > { %1988 = vmatmul.msk.bf16.gmra.mxu2 %vm378_vm0, %v2131_v30  ;;  %2016 = vmatmul.msk.bf16.gmra.mxu3 %vm378_vm0, %v2135_v31 }
  0x9d   : > { %1933 = vmatmul.msk.bf16.gmra.mxu0 %vm378_vm0, %v2124_v32  ;;  %1961 = vmatmul.msk.bf16.gmra.mxu1 %vm378_vm0, %v2128_v33 }
  0x9e   : > { %1989 = vmatmul.msk.bf16.gmra.mxu2 %vm378_vm0, %v2132_v34  ;;  %2017 = vmatmul.msk.bf16.gmra.mxu3 %vm378_vm0, %v2136_v35 }
  0xaa   : > { %v400_v36 = vpop.f32.mrf.mxu0  ;;  %v470_v37 = vpop.f32.mrf.mxu1 }
  0xab   : > { %v490_v38 = vmax.f32 %v400_v36, %v470_v37 }
  0xb1   : > { %v548_v39 = vpop.f32.mrf.mxu2  ;;  %v626_v40 = vpop.f32.mrf.mxu3 }
  0xb2   : > { %v568_v41 = vmax.f32 %v490_v38, %v548_v39  ;;  %v402_v42 = vpop.f32.mrf.mxu0  ;;  %v472_v43 = vpop.f32.mrf.mxu1 }
  0xb3   : > { %v491_v46 = vmax.f32 %v402_v42, %v472_v43 }
  0xb4   : > { %v646_v44 = vmax.f32 %v568_v41, %v626_v40 }
  0xb6   : > { %v654_v45 = vpack.c.bf16 %v646_v44, %v646_v44 }
  0xb8   : > { %663 = vst.msk [vmem:[#allocation2] sm:$0xf] %vm662_vm1, %v654_v45 }
  0xb9   : > { %v550_v47 = vpop.f32.mrf.mxu2  ;;  %v628_v48 = vpop.f32.mrf.mxu3 }
  0xba   : > { %v569_v49 = vmax.f32 %v491_v46, %v550_v47  ;;  %v405_v50 = vpop.f32.mrf.mxu0  ;;  %v475_v51 = vpop.f32.mrf.mxu1 }
  0xbb   : > { %v492_v54 = vmax.f32 %v405_v50, %v475_v51 }
  0xbc   : > { %v647_v52 = vmax.f32 %v569_v49, %v628_v48 }
  0xbe   : > { %v655_v53 = vpack.c.bf16 %v647_v52, %v647_v52 }
  0xc0   : > { %664 = vst.msk [vmem:[#allocation2 + $0x4] sm:$0xf] %vm662_vm1, %v655_v53 }
  0xc1   : > { %v553_v55 = vpop.f32.mrf.mxu2  ;;  %v631_v56 = vpop.f32.mrf.mxu3 }
  0xc2   : > { %v570_v57 = vmax.f32 %v492_v54, %v553_v55  ;;  %v407_v58 = vpop.f32.mrf.mxu0  ;;  %v477_v59 = vpop.f32.mrf.mxu1 }
  0xc3   : > { %v493_v62 = vmax.f32 %v407_v58, %v477_v59 }
  0xc4   : > { %v648_v60 = vmax.f32 %v570_v57, %v631_v56 }
  0xc6   : > { %v656_v61 = vpack.c.bf16 %v648_v60, %v648_v60 }
  0xc8   : > { %665 = vst.msk [vmem:[#allocation2 + $0x8] sm:$0xf] %vm662_vm1, %v656_v61 }
  0xc9   : > { %v555_v63 = vpop.f32.mrf.mxu2  ;;  %v633_v0 = vpop.f32.mrf.mxu3 }
  0xca   : > { %v571_v1 = vmax.f32 %v493_v62, %v555_v63  ;;  %v410_v2 = vpop.f32.mrf.mxu0  ;;  %v480_v3 = vpop.f32.mrf.mxu1 }
  0xcb   : > { %v494_v6 = vmax.f32 %v410_v2, %v480_v3 }
  0xcc   : > { %v649_v4 = vmax.f32 %v571_v1, %v633_v0 }
  0xce   : > { %v657_v5 = vpack.c.bf16 %v649_v4, %v649_v4 }
  0xd0   : > { %666 = vst.msk [vmem:[#allocation2 + $0xc] sm:$0xf] %vm662_vm1, %v657_v5 }
  0xd1   : > { %v558_v7 = vpop.f32.mrf.mxu2  ;;  %v636_v8 = vpop.f32.mrf.mxu3 }
  0xd2   : > { %v572_v9 = vmax.f32 %v494_v6, %v558_v7  ;;  %v412_v10 = vpop.f32.mrf.mxu0  ;;  %v482_v11 = vpop.f32.mrf.mxu1 }
  0xd3   : > { %v495_v14 = vmax.f32 %v412_v10, %v482_v11 }
  0xd4   : > { %v650_v12 = vmax.f32 %v572_v9, %v636_v8 }
  0xd6   : > { %v658_v13 = vpack.c.bf16 %v650_v12, %v650_v12 }
  0xd8   : > { %667 = vst.msk [vmem:[#allocation2 + $0x10] sm:$0xf] %vm662_vm1, %v658_v13 }
  0xd9   : > { %v560_v15 = vpop.f32.mrf.mxu2  ;;  %v638_v16 = vpop.f32.mrf.mxu3 }
  0xda   : > { %v573_v17 = vmax.f32 %v495_v14, %v560_v15  ;;  %v415_v18 = vpop.f32.mrf.mxu0  ;;  %v485_v19 = vpop.f32.mrf.mxu1 }
  0xdb   : > { %v496_v22 = vmax.f32 %v415_v18, %v485_v19 }
  0xdc   : > { %v651_v20 = vmax.f32 %v573_v17, %v638_v16 }
  0xde   : > { %v659_v21 = vpack.c.bf16 %v651_v20, %v651_v20 }
  0xe0   : > { %668 = vst.msk [vmem:[#allocation2 + $0x14] sm:$0xf] %vm662_vm1, %v659_v21 }
  0xe1   : > { %v563_v23 = vpop.f32.mrf.mxu2  ;;  %v641_v24 = vpop.f32.mrf.mxu3 }
  0xe2   : > { %v574_v25 = vmax.f32 %v496_v22, %v563_v23  ;;  %v417_v26 = vpop.f32.mrf.mxu0  ;;  %v487_v27 = vpop.f32.mrf.mxu1 }
  0xe3   : > { %v497_v30 = vmax.f32 %v417_v26, %v487_v27 }
  0xe4   : > { %v652_v28 = vmax.f32 %v574_v25, %v641_v24 }
  0xe6   : > { %v660_v29 = vpack.c.bf16 %v652_v28, %v652_v28 }
  0xe8   : > { %669 = vst.msk [vmem:[#allocation2 + $0x18] sm:$0xf] %vm662_vm1, %v660_v29 }
  0xe9   : > { %v565_v31 = vpop.f32.mrf.mxu2  ;;  %v643_v32 = vpop.f32.mrf.mxu3 }
  0xea   : > { %v575_v33 = vmax.f32 %v497_v30, %v565_v31  ;;  %v736_v34 = vpop.f32.mrf.mxu0  ;;  %v805_v35 = vpop.f32.mrf.mxu1 }
  0xeb   : > { %v825_v38 = vmax.f32 %v736_v34, %v805_v35 }
  0xec   : > { %v653_v36 = vmax.f32 %v575_v33, %v643_v32 }
  0xee   : > { %v661_v37 = vpack.c.bf16 %v653_v36, %v653_v36 }
  0xf0   : > { %670 = vst.msk [vmem:[#allocation2 + $0x1c] sm:$0xf] %vm662_vm1, %v661_v37 }
  0xf1   : > { %v882_v39 = vpop.f32.mrf.mxu2  ;;  %v959_v40 = vpop.f32.mrf.mxu3 }
  0xf2   : > { %v902_v41 = vmax.f32 %v825_v38, %v882_v39  ;;  %v738_v42 = vpop.f32.mrf.mxu0  ;;  %v807_v43 = vpop.f32.mrf.mxu1 }
  0xf3   : > { %v826_v46 = vmax.f32 %v738_v42, %v807_v43 }
  0xf4   : > { %v979_v44 = vmax.f32 %v902_v41, %v959_v40 }
  0xf6   : > { %v987_v45 = vpack.c.bf16 %v979_v44, %v979_v44 }
  0xf8   : > { %996 = vst.msk [vmem:[#allocation3] sm:$0xf] %vm995_vm2, %v987_v45 }
  0xf9   : > { %v884_v47 = vpop.f32.mrf.mxu2  ;;  %v961_v48 = vpop.f32.mrf.mxu3 }
  0xfa   : > { %v903_v49 = vmax.f32 %v826_v46, %v884_v47  ;;  %v741_v50 = vpop.f32.mrf.mxu0  ;;  %v810_v51 = vpop.f32.mrf.mxu1 }
  0xfb   : > { %v827_v54 = vmax.f32 %v741_v50, %v810_v51 }
  0xfc   : > { %v980_v52 = vmax.f32 %v903_v49, %v961_v48 }
  0xfe   : > { %v988_v53 = vpack.c.bf16 %v980_v52, %v980_v52 }
 0x100   : > { %997 = vst.msk [vmem:[#allocation3 + $0x4] sm:$0xf] %vm995_vm2, %v988_v53 }
 0x101   : > { %v887_v55 = vpop.f32.mrf.mxu2  ;;  %v964_v56 = vpop.f32.mrf.mxu3 }
 0x102   : > { %v904_v57 = vmax.f32 %v827_v54, %v887_v55  ;;  %v743_v58 = vpop.f32.mrf.mxu0  ;;  %v812_v59 = vpop.f32.mrf.mxu1 }
 0x103   : > { %v828_v62 = vmax.f32 %v743_v58, %v812_v59 }
 0x104   : > { %v981_v60 = vmax.f32 %v904_v57, %v964_v56 }
 0x106   : > { %v989_v61 = vpack.c.bf16 %v981_v60, %v981_v60 }
 0x108   : > { %998 = vst.msk [vmem:[#allocation3 + $0x8] sm:$0xf] %vm995_vm2, %v989_v61 }
 0x109   : > { %v889_v63 = vpop.f32.mrf.mxu2  ;;  %v966_v0 = vpop.f32.mrf.mxu3 }
 0x10a   : > { %v905_v1 = vmax.f32 %v828_v62, %v889_v63  ;;  %v746_v2 = vpop.f32.mrf.mxu0  ;;  %v815_v3 = vpop.f32.mrf.mxu1 }
 0x10b   : > { %v829_v6 = vmax.f32 %v746_v2, %v815_v3 }
 0x10c   : > { %v982_v4 = vmax.f32 %v905_v1, %v966_v0 }
 0x10e   : > { %v990_v5 = vpack.c.bf16 %v982_v4, %v982_v4 }
 0x110   : > { %999 = vst.msk [vmem:[#allocation3 + $0xc] sm:$0xf] %vm995_vm2, %v990_v5 }
 0x111   : > { %v892_v7 = vpop.f32.mrf.mxu2  ;;  %v969_v8 = vpop.f32.mrf.mxu3 }
 0x112   : > { %v906_v9 = vmax.f32 %v829_v6, %v892_v7  ;;  %v748_v10 = vpop.f32.mrf.mxu0  ;;  %v817_v11 = vpop.f32.mrf.mxu1 }
 0x113   : > { %v830_v14 = vmax.f32 %v748_v10, %v817_v11 }
 0x114   : > { %v983_v12 = vmax.f32 %v906_v9, %v969_v8 }
 0x116   : > { %v991_v13 = vpack.c.bf16 %v983_v12, %v983_v12 }
 0x118   : > { %1000 = vst.msk [vmem:[#allocation3 + $0x10] sm:$0xf] %vm995_vm2, %v991_v13 }
 0x119   : > { %v894_v15 = vpop.f32.mrf.mxu2  ;;  %v971_v16 = vpop.f32.mrf.mxu3 }
 0x11a   : > { %v907_v17 = vmax.f32 %v830_v14, %v894_v15  ;;  %v751_v18 = vpop.f32.mrf.mxu0  ;;  %v820_v19 = vpop.f32.mrf.mxu1 }
 0x11b   : > { %v831_v22 = vmax.f32 %v751_v18, %v820_v19 }
 0x11c   : > { %v984_v20 = vmax.f32 %v907_v17, %v971_v16 }
 0x11e   : > { %v992_v21 = vpack.c.bf16 %v984_v20, %v984_v20 }
 0x120   : > { %1001 = vst.msk [vmem:[#allocation3 + $0x14] sm:$0xf] %vm995_vm2, %v992_v21 }
 0x121   : > { %v897_v23 = vpop.f32.mrf.mxu2  ;;  %v974_v24 = vpop.f32.mrf.mxu3 }
 0x122   : > { %v908_v25 = vmax.f32 %v831_v22, %v897_v23  ;;  %v753_v27 = vpop.f32.mrf.mxu0  ;;  %v822_v28 = vpop.f32.mrf.mxu1 }
 0x123   : > { %v832_v30 = vmax.f32 %v753_v27, %v822_v28 }
 0x124   : > { %v985_v26 = vmax.f32 %v908_v25, %v974_v24 }
 0x126   : > { %v993_v29 = vpack.c.bf16 %v985_v26, %v985_v26 }
 0x128   : > { %1002 = vst.msk [vmem:[#allocation3 + $0x18] sm:$0xf] %vm995_vm2, %v993_v29 }
 0x129   : > { %v899_v31 = vpop.f32.mrf.mxu2  ;;  %v976_v33 = vpop.f32.mrf.mxu3 }
 0x12a   : > { %v909_v32 = vmax.f32 %v832_v30, %v899_v31 }
 0x12c   : > { %v986_v34 = vmax.f32 %v909_v32, %v976_v33 }
 0x12e   : > { %v994_v35 = vpack.c.bf16 %v986_v34, %v986_v34 }
 0x130   : > { %1003 = vst.msk [vmem:[#allocation3 + $0x1c] sm:$0xf] %vm995_vm2, %v994_v35 }
 0x131 PF: > { %v2138_v36 = vld [vmem:[%s2963_s2 + $0x8] sm:$0xff]  ;;  %v2137_v37 = vld [vmem:[%s2963_s2] sm:$0xff]  ;;  %vm1044_vm3 = vcmask 261120   ;;  %v2628_v41 = vld [vmem:[%s2515_s8 + $0x10] sm:$0xff]  ;;  %vm1154_vm4 = vcmask 31744   ;;  %vm1240_vm5 = vcmask 523264  }
 0x132   : > { %1075 = vmatpush.bf16.msra.mxu0 %v2138_v36  ;;  %v2619_v38 = vld [vmem:[%s2515_s8] sm:$0xff]  ;;  %v2622_v39 = vld [vmem:[%s2515_s8 + $0x8] sm:$0xff]  ;;  %v2631_v42 = vld [vmem:[%s2515_s8 + $0x18] sm:$0xff]  ;;  %vm1546_vm6 = vcmask 130048   ;;  %s1620_s14 = sld [smem:[#allocation4]]  ;;  %s2096_s17 = sshll.u32 %s2367_s30, 5 }
 0x133   : > { %v1020_v40 = vpack.c.bf16 %v2622_v39, %v2619_v38  ;;  %v1021_v43 = vpack.c.bf16 %v2631_v42, %v2628_v41  ;;  %v2637_v44 = vld [vmem:[%s2515_s8 + $0x20] sm:$0xff]  ;;  %v2640_v45 = vld [vmem:[%s2515_s8 + $0x28] sm:$0xff]  ;;  %v2142_v47 = vld [vmem:[#allocation2 + $0x18] sm:$0xff]  ;;  %s1682_s18 = sadd.s32 %s2096_s17, %s2499_s22  ;;  %s1685_s12 = sshll.u32 %s2517_s20, 4  ;;  %s1686_s12 = int_to_ptr.vmem [resolvable:$true] %s1685_s12 }
 0x134   : > { %v1022_v46 = vpack.c.bf16 %v2640_v45, %v2637_v44  ;;  %v1189_v48 = vsel %vm1154_vm4, %v2142_v47, 0  ;;  %v2141_v49 = vld [vmem:[#allocation2 + $0x10] sm:$0xff]  ;;  %v2651_v52 = vld [vmem:[%s2515_s8 + $0x38] sm:$0xff]  ;;  %v2140_v54 = vld [vmem:[#allocation2 + $0x8] sm:$0xff]  ;;  %s2097_s19 = sshll.u32 %s1682_s18, 3  ;;  %s2983_s22 = sand.u32 1, %s2355_s27  }
 0x135   : > { %1195 = vmatpush.bf16.xpose.msra.mxu1 %v1189_v48  ;;  %v1186_v50 = vsel %vm1154_vm4, %v2141_v49, 0  ;;  %v2648_v51 = vld [vmem:[%s2515_s8 + $0x30] sm:$0xff]  ;;  %v1183_v55 = vsel %vm1154_vm4, %v2140_v54, 0  ;;  %v2658_v56 = vld [vmem:[%s2515_s8 + $0x40] sm:$0xff]  ;;  %v2661_v57 = vld [vmem:[%s2515_s8 + $0x48] sm:$0xff]  ;;  %s1684_s9 = scalar_lea.hbm %s2968_s7, %s2097_s19  ;;  %s1671_s28 = scalar_lea.sflag [#allocation6], %s2983_s22 }
 0x136   : > { %1076 = vmatpush.bf16.msra.mxu0 %v2137_v37  ;;  %v1023_v53 = vpack.c.bf16 %v2651_v52, %v2648_v51  ;;  %v1024_v58 = vpack.c.bf16 %v2661_v57, %v2658_v56  ;;  %v2667_v59 = vld [vmem:[%s2515_s8 + $0x50] sm:$0xff]  ;;  %v2670_v60 = vld [vmem:[%s2515_s8 + $0x58] sm:$0xff]  ;;  %v2139_v61 = vld [vmem:[#allocation2] sm:$0xff]  ;;  %s1687_s30 = sshll.u32 %s1684_s9, 4  ;;  %s2305_s6 = scalar_lea.hbm %s2968_s7, 512  ;;  %s1688_s30 = int_to_ptr.hbm [resolvable:$true] %s1687_s30 }
 0x137   : > { %v1025_v62 = vpack.c.bf16 %v2670_v60, %v2667_v59  ;;  %v1180_v63 = vsel %vm1154_vm4, %v2139_v61, 0  ;;  %v2677_v0 = vld [vmem:[%s2515_s8 + $0x60] sm:$0xff]  ;;  %v2680_v1 = vld [vmem:[%s2515_s8 + $0x68] sm:$0xff]  ;;  %v2686_v4 = vld [vmem:[%s2515_s8 + $0x70] sm:$0xff]  ;;  %s2299_s29 = sshra.s32 %s1688_s30, 4  ;;  %s2300_s29 = int_to_ptr.hbm [resolvable:$true] %s2299_s29 }
 0x138   : > { %v1026_v2 = vpack.c.bf16 %v2680_v1, %v2677_v0  ;;  %v2689_v5 = vld [vmem:[%s2515_s8 + $0x78] sm:$0xff]  ;;  %s2301_s13 = scalar_lea.hbm %s2300_s29, 128  ;;  %p2306_p5 = scmp.lt.s32.totalorder %s2300_s29, %s2968_s7 }
 0x139   : > { %2026 = vmatmul.msk.bf16.vlgmr.msra.gmra.mxu0 %vm1044_vm3, %v1020_v40  ;;  %v1027_v6 = vpack.c.bf16 %v2689_v5, %v2686_v4  ;;  %p2302_p1 = scmp.ne.s32.totalorder %s2300_s29, %s2301_s13  ;;  %p2307_p6 = scmp.lt.s32.totalorder %s2305_s6, %s2301_s13 }
 0x13b   : > { %p2303_p2 = pnand %p2302_p1, %p2477_p3  ;;  %p2308_p7 = por %p2307_p6, %p2306_p5 }
 0x13d   : > { %1196 = vmatpush.bf16.xpose.msra.mxu1 %v1186_v50  ;;  %p2304_p4 = pneg %p2303_p2 }
 0x13f   : > { %p2309_p9 = pnand %p2308_p7, %p2304_p4 }
 0x145   : > { %1197 = vmatpush.bf16.xpose.msra.mxu1 %v1183_v55 }
 0x149   : > { %2027 = vmatmul.msk.bf16.gmra.mxu0 %vm1044_vm3, %v1021_v43 }
 0x14d   : > { %1198 = vmatpush.bf16.xpose.msra.mxu1 %v1180_v63 }
 0x159   : > { %2028 = vmatmul.msk.bf16.gmra.mxu0 %vm1044_vm3, %v1022_v46 }
 0x169   : > { %2029 = vmatmul.msk.bf16.gmra.mxu0 %vm1044_vm3, %v1023_v53 }
 0x179   : > { %2030 = vmatmul.msk.bf16.gmra.mxu0 %vm1044_vm3, %v1024_v58 }
 0x189   : > { %2031 = vmatmul.msk.bf16.gmra.mxu0 %vm1044_vm3, %v1025_v62 }
 0x199   : > { %2032 = vmatmul.msk.bf16.gmra.mxu0 %vm1044_vm3, %v1026_v2 }
 0x1a9   : > { %2033 = vmatmul.msk.bf16.gmra.mxu0 %vm1044_vm3, %v1027_v6 }
 0x1b6   : > { %v1078_v3 = vpop.f32.mrf.mxu0 }
 0x1be   : > { %v1080_v7 = vpop.f32.mrf.mxu0 }
 0x1bf   : > { %v1118_v8 = vpack.c.bf16 %v1080_v7, %v1078_v3 }
 0x1c1   : > { %2050 = vmatmul.msk.bf16.vlgmr.msra.gmra.mxu1 %vm1154_vm4, %v1118_v8 }
 0x1c6   : > { %v1083_v9 = vpop.f32.mrf.mxu0 }
 0x1ce   : > { %v1085_v10 = vpop.f32.mrf.mxu0 }
 0x1cf   : > { %v1119_v11 = vpack.c.bf16 %v1085_v10, %v1083_v9 }
 0x1d1   : > { %2051 = vmatmul.msk.bf16.gmra.mxu1 %vm1154_vm4, %v1119_v11 }
 0x1d6   : > { %v1088_v12 = vpop.f32.mrf.mxu0 }
 0x1de   : > { %v1090_v13 = vpop.f32.mrf.mxu0 }
 0x1df   : > { %v1120_v14 = vpack.c.bf16 %v1090_v13, %v1088_v12 }
 0x1e1   : > { %2052 = vmatmul.msk.bf16.gmra.mxu1 %vm1154_vm4, %v1120_v14 }
 0x1e6   : > { %v1093_v15 = vpop.f32.mrf.mxu0 }
 0x1ee   : > { %v1095_v16 = vpop.f32.mrf.mxu0 }
 0x1ef   : > { %v1121_v17 = vpack.c.bf16 %v1095_v16, %v1093_v15 }
 0x1f1   : > { %2053 = vmatmul.msk.bf16.gmra.mxu1 %vm1154_vm4, %v1121_v17 }
 0x1f6   : > { %v1098_v18 = vpop.f32.mrf.mxu0 }
 0x1fe   : > { %v1100_v19 = vpop.f32.mrf.mxu0 }
 0x1ff   : > { %v1122_v20 = vpack.c.bf16 %v1100_v19, %v1098_v18 }
 0x201   : > { %2054 = vmatmul.msk.bf16.gmra.mxu1 %vm1154_vm4, %v1122_v20 }
 0x206   : > { %v1103_v21 = vpop.f32.mrf.mxu0 }
 0x20e   : > { %v1105_v22 = vpop.f32.mrf.mxu0 }
 0x20f   : > { %v1123_v23 = vpack.c.bf16 %v1105_v22, %v1103_v21 }
 0x211   : > { %2055 = vmatmul.msk.bf16.gmra.mxu1 %vm1154_vm4, %v1123_v23 }
 0x216   : > { %v1108_v24 = vpop.f32.mrf.mxu0 }
 0x21e   : > { %v1110_v25 = vpop.f32.mrf.mxu0 }
 0x21f   : > { %v1124_v26 = vpack.c.bf16 %v1110_v25, %v1108_v24 }
 0x221   : > { %2056 = vmatmul.msk.bf16.gmra.mxu1 %vm1154_vm4, %v1124_v26 }
 0x226   : > { %v1113_v27 = vpop.f32.mrf.mxu0 }
 0x22e   : > { %v1115_v29 = vpop.f32.mrf.mxu0 }
 0x22f   : > { %v1125_v31 = vpack.c.bf16 %v1115_v29, %v1113_v27 }
 0x231   : > { %2057 = vmatmul.msk.bf16.gmra.mxu1 %vm1154_vm4, %v1125_v31 }
 0x23e   : > { %v1200_v28 = vpop.f32.mrf.mxu1 }
 0x23f   : > { %v1241_v30 = vsel %vm1240_vm5, %v1200_v28, -inf }
 0x240   : > { %1242 = vmax.xlane.f32.xlu0 %v1241_v30 }
 0x246   : > { %v1202_v32 = vpop.f32.mrf.mxu1 }
 0x247   : > { %v1244_v33 = vsel %vm1240_vm5, %v1202_v32, -inf }
 0x248   : > { %1245 = vmax.xlane.f32.xlu0 %v1244_v33 }
 0x24e   : > { %v1205_v34 = vpop.f32.mrf.mxu1 }
 0x24f   : > { %v1247_v35 = vsel %vm1240_vm5, %v1205_v34, -inf }
 0x250   : > { %1248 = vmax.xlane.f32.xlu1 %v1247_v35 }
 0x256   : > { %v1207_v36 = vpop.f32.mrf.mxu1 }
 0x257   : > { %v1250_v37 = vsel %vm1240_vm5, %v1207_v36, -inf }
 0x258   : > { %1251 = vmax.xlane.f32.xlu1 %v1250_v37 }
 0x25e   : > { %v1210_v40 = vpop.f32.mrf.mxu1 }
 0x25f   : > { %v1253_v43 = vsel %vm1240_vm5, %v1210_v40, -inf }
 0x260   : > { %1254 = vmax.xlane.f32.xlu2 %v1253_v43 }
 0x266   : > { %v1212_v46 = vpop.f32.mrf.mxu1 }
 0x267   : > { %v1256_v47 = vsel %vm1240_vm5, %v1212_v46, -inf }
 0x268   : > { %1257 = vmax.xlane.f32.xlu2 %v1256_v47 }
 0x26e   : > { %v2708_v48 = vpop.f32.mrf.mxu1 }
 0x26f   : > { %v1259_v49 = vsel %vm1240_vm5, %v2708_v48, -inf }
 0x270   : > { %1260 = vmax.xlane.f32.xlu0 %v1259_v49 }
 0x276   : > { %v2712_v50 = vpop.f32.mrf.mxu1 }
 0x277   : > { %v1262_v53 = vsel %vm1240_vm5, %v2712_v50, -inf }
 0x278   : > { %1263 = vmax.xlane.f32.xlu1 %v1262_v53 }
 0x27e   : > { %v2716_v54 = vpop.f32.mrf.mxu1 }
 0x27f   : > { %v1265_v55 = vsel %vm1240_vm5, %v2716_v54, -inf }
 0x280   : > { %1266 = vmax.xlane.f32.xlu1 %v1265_v55 }
 0x286   : > { %v2720_v63 = vpop.f32.mrf.mxu1 }
 0x287   : > { %v1268_v15 = vsel %vm1240_vm5, %v2720_v63, -inf }
 0x28e   : > { %v2726_v9 = vpop.f32.mrf.mxu1 }
 0x28f   : > { %v1271_v22 = vsel %vm1240_vm5, %v2726_v9, -inf }
 0x296   : > { %v2734_v17 = vpop.f32.mrf.mxu1 }
 0x297   : > { %v1274_v29 = vsel %vm1240_vm5, %v2734_v17, -inf }
 0x29e   : > { %v2744_v26 = vpop.f32.mrf.mxu1 }
 0x29f   : > { %v1277_v35 = vsel %vm1240_vm5, %v2744_v26, -inf }
 0x2b3   : > { %v1243_v58 = vpop.xlane.xlu0 %1242 }
 0x2b4   : > { %v1289_v61 = vsub.f32 %v1200_v28, %v1243_v58 }
 0x2b6   : > { %v1305_v62 = vmul.f32 1.442695, %v1289_v61 }
 0x2b8   : > { %2221 = vpow2.f32 %v1305_v62 }
 0x2bb   : > { %v1246_v2 = vpop.xlane.xlu0 %1245 }
 0x2bc   : > { %v1290_v3 = vsub.f32 %v1202_v32, %v1246_v2 }
 0x2be   : > { %v2722_v6 = vpop.eup %2221  ;;  %v1307_v7 = vmul.f32 1.442695, %v1290_v3 }
 0x2bf   : > { %v1337_v8 = vsel %vm1240_vm5, %v2722_v6, 0.0 }
 0x2c0   : > { %2223 = vpow2.f32 %v1307_v7  ;;  %1338 = vadd.xlane.f32.xlu2 %v1337_v8 }
 0x2c3   : > { %v1249_v10 = vpop.xlane.xlu1 %1248 }
 0x2c4   : > { %v1291_v11 = vsub.f32 %v1205_v34, %v1249_v10 }
 0x2c6   : > { %v2728_v12 = vpop.eup %2223  ;;  %v1309_v13 = vmul.f32 1.442695, %v1291_v11 }
 0x2c7   : > { %v1340_v14 = vsel %vm1240_vm5, %v2728_v12, 0.0 }
 0x2c8   : > { %2225 = vpow2.f32 %v1309_v13  ;;  %1341 = vadd.xlane.f32.xlu0 %v1340_v14  ;;  %1269 = vmax.xlane.f32.xlu2 %v1268_v15 }
 0x2cb   : > { %v1252_v16 = vpop.xlane.xlu1 %1251 }
 0x2cc   : > { %v1292_v18 = vsub.f32 %v1207_v36, %v1252_v16  ;;  %v2756_v36 = vpop.f32.mrf.mxu1  ;;  %v2146_v16 = vld [vmem:[#allocation3 + $0x18] sm:$0xff] }
 0x2cd   : > { %v1280_v49 = vsel %vm1240_vm5, %v2756_v36, -inf  ;;  %1485 = vmatpush.bf16.msra.mxu2 %v2146_v16 }
 0x2ce   : > { %v2736_v19 = vpop.eup %2225  ;;  %v1311_v20 = vmul.f32 1.442695, %v1292_v18  ;;  %v2144_v18 = vld [vmem:[#allocation3 + $0x8] sm:$0xff] }
 0x2cf   : > { %v1343_v21 = vsel %vm1240_vm5, %v2736_v19, 0.0 }
 0x2d0   : > { %2227 = vpow2.f32 %v1311_v20  ;;  %1344 = vadd.xlane.f32.xlu0 %v1343_v21  ;;  %1272 = vmax.xlane.f32.xlu2 %v1271_v22  ;;  %v2143_v20 = vld [vmem:[#allocation3] sm:$0xff] }
 0x2d3   : > { %v1255_v23 = vpop.xlane.xlu2 %1254 }
 0x2d4   : > { %v1293_v24 = vsub.f32 %v1210_v40, %v1255_v23  ;;  %v2765_v53 = vpop.f32.mrf.mxu1 }
 0x2d5   : > { %v1283_v2 = vsel %vm1240_vm5, %v2765_v53, -inf }
 0x2d6   : > { %v2742_v25 = vpop.eup %2227  ;;  %v1313_v27 = vmul.f32 1.442695, %v1293_v24 }
 0x2d7   : > { %v1346_v28 = vsel %vm1240_vm5, %v2742_v25, 0.0 }
 0x2d8   : > { %2229 = vpow2.f32 %v1313_v27  ;;  %1347 = vadd.xlane.f32.xlu1 %v1346_v28  ;;  %1275 = vmax.xlane.f32.xlu0 %v1274_v29 }
 0x2db   : > { %v1258_v30 = vpop.xlane.xlu2 %1257 }
 0x2dc   : > { %v1294_v31 = vsub.f32 %v1212_v46, %v1258_v30  ;;  %v2774_v7 = vpop.f32.mrf.mxu1 }
 0x2dd   : > { %v1286_v13 = vsel %vm1240_vm5, %v2774_v7, -inf }
 0x2de   : > { %v2750_v32 = vpop.eup %2229  ;;  %v1315_v33 = vmul.f32 1.442695, %v1294_v31 }
 0x2df   : > { %v1349_v34 = vsel %vm1240_vm5, %v2750_v32, 0.0 }
 0x2e0   : > { %2231 = vpow2.f32 %v1315_v33  ;;  %1350 = vadd.xlane.f32.xlu1 %v1349_v34  ;;  %1278 = vmax.xlane.f32.xlu0 %v1277_v35 }
 0x2e3   : > { %v1261_v37 = vpop.xlane.xlu0 %1260 }
 0x2e4   : > { %v1295_v40 = vsub.f32 %v2708_v48, %v1261_v37 }
 0x2e6   : > { %v2759_v43 = vpop.eup %2231  ;;  %v1317_v46 = vmul.f32 1.442695, %v1295_v40 }
 0x2e7   : > { %v1352_v47 = vsel %vm1240_vm5, %v2759_v43, 0.0 }
 0x2e8   : > { %2233 = vpow2.f32 %v1317_v46  ;;  %1353 = vadd.xlane.f32.xlu2 %v1352_v47  ;;  %1281 = vmax.xlane.f32.xlu1 %v1280_v49 }
 0x2eb   : > { %v1264_v55 = vpop.xlane.xlu1 %1263 }
 0x2ec   : > { %v1296_v58 = vsub.f32 %v2712_v50, %v1264_v55 }
 0x2ee   : > { %v2768_v61 = vpop.eup %2233  ;;  %v1319_v48 = vmul.f32 1.442695, %v1296_v58 }
 0x2ef   : > { %v1355_v62 = vsel %vm1240_vm5, %v2768_v61, 0.0 }
 0x2f0   : > { %2235 = vpow2.f32 %v1319_v48  ;;  %1356 = vadd.xlane.f32.xlu2 %v1355_v62  ;;  %1284 = vmax.xlane.f32.xlu1 %v1283_v2 }
 0x2f3   : > { %v1267_v3 = vpop.xlane.xlu1 %1266 }
 0x2f4   : > { %v1297_v8 = vsub.f32 %v2716_v54, %v1267_v3  ;;  %v2145_v54 = vld [vmem:[#allocation3 + $0x10] sm:$0xff] }
 0x2f5   : > { %1486 = vmatpush.bf16.msra.mxu2 %v2145_v54 }
 0x2f6   : > { %v2777_v10 = vpop.eup %2235  ;;  %v1321_v50 = vmul.f32 1.442695, %v1297_v8 }
 0x2f7   : > { %v1358_v11 = vsel %vm1240_vm5, %v2777_v10, 0.0 }
 0x2f8   : > { %2237 = vpow2.f32 %v1321_v50  ;;  %1359 = vadd.xlane.f32.xlu0 %v1358_v11  ;;  %1287 = vmax.xlane.f32.xlu2 %v1286_v13 }
 0x2f9   : > { %1487 = vmatpush.bf16.msra.mxu2 %v2144_v18 }
 0x2fd   : > { %1488 = vmatpush.bf16.msra.mxu2 %v2143_v20 }
 0x2fe   : > { %v2783_v14 = vpop.eup %2237 }
 0x2ff   : > { %v1361_v15 = vsel %vm1240_vm5, %v2783_v14, 0.0 }
 0x300   : > { %1362 = vadd.xlane.f32.xlu0 %v1361_v15 }
 0x333   : > { %v1339_v21 = vpop.xlane.xlu2 %1338 }
 0x334   : > { %2239 = vrcp.f32 %v1339_v21 }
 0x33a   : > { %v2240_v28 = vpop.eup %2239 }
 0x33b   : > { %v1342_v22 = vpop.xlane.xlu0 %1341  ;;  %v1270_v23 = vpop.xlane.xlu2 %1269  ;;  %v1401_v33 = vmul.f32 %v2240_v28, %v2722_v6 }
 0x33c   : > { %2241 = vrcp.f32 %v1342_v22  ;;  %v1298_v24 = vsub.f32 %v2720_v63, %v1270_v23 }
 0x33e   : > { %v1323_v27 = vmul.f32 1.442695, %v1298_v24 }
 0x340   : > { %2243 = vpow2.f32 %v1323_v27 }
 0x342   : > { %v2242_v29 = vpop.eup %2241 }
 0x343   : > { %v1345_v30 = vpop.xlane.xlu0 %1344  ;;  %v1273_v31 = vpop.xlane.xlu2 %1272  ;;  %v1402_v34 = vmul.f32 %v2242_v29, %v2728_v12 }
 0x344   : > { %v1299_v35 = vsub.f32 %v2726_v9, %v1273_v31 }
 0x345   : > { %v1417_v37 = vpack.c.bf16 %v1402_v34, %v1401_v33 }
 0x346   : > { %v2791_v40 = vpop.eup %2243  ;;  %v1325_v46 = vmul.f32 1.442695, %v1299_v35 }
 0x347   : > { %2074 = vmatmul.msk.bf16.vlgmr.msra.gmra.mxu2 %vm1240_vm5, %v1417_v37  ;;  %v1364_v63 = vsel %vm1240_vm5, %v2791_v40, 0.0 }
 0x348   : > { %2245 = vpow2.f32 %v1325_v46  ;;  %1365 = vadd.xlane.f32.xlu1 %v1364_v63 }
 0x349   : > { %2247 = vrcp.f32 %v1345_v30 }
 0x34b   : > { %v1348_v47 = vpop.xlane.xlu1 %1347  ;;  %v1276_v49 = vpop.xlane.xlu0 %1275 }
 0x34c   : > { %2249 = vrcp.f32 %v1348_v47  ;;  %v1300_v6 = vsub.f32 %v2734_v17, %v1276_v49 }
 0x34e   : > { %v2797_v12 = vpop.eup %2245  ;;  %v1327_v9 = vmul.f32 1.442695, %v1300_v6 }
 0x34f   : > { %v1367_v55 = vsel %vm1240_vm5, %v2797_v12, 0.0  ;;  %v2248_v58 = vpop.eup %2247 }
 0x350   : > { %2251 = vpow2.f32 %v1327_v9  ;;  %1368 = vadd.xlane.f32.xlu2 %v1367_v55  ;;  %v1403_v3 = vmul.f32 %v2248_v58, %v2736_v19  ;;  %v2147_v9 = vld [vmem:[%s2966_s5] sm:$0xff] }
 0x351   : > { %1578 = vmatpush.bf16.msra.mxu3 %v2147_v9 }
 0x352   : > { %v2250_v48 = vpop.eup %2249 }
 0x353   : > { %v1351_v62 = vpop.xlane.xlu1 %1350  ;;  %v1279_v2 = vpop.xlane.xlu0 %1278  ;;  %v1404_v8 = vmul.f32 %v2250_v48, %v2742_v25 }
 0x354   : > { %v1301_v50 = vsub.f32 %v2744_v26, %v1279_v2 }
 0x355   : > { %v1418_v11 = vpack.c.bf16 %v1404_v8, %v1403_v3 }
 0x356   : > { %v2804_v17 = vpop.eup %2251  ;;  %v1329_v13 = vmul.f32 1.442695, %v1301_v50 }
 0x357   : > { %2075 = vmatmul.msk.bf16.gmra.mxu2 %vm1240_vm5, %v1418_v11  ;;  %v1370_v15 = vsel %vm1240_vm5, %v2804_v17, 0.0 }
 0x358   : > { %2253 = vpow2.f32 %v1329_v13  ;;  %1371 = vadd.xlane.f32.xlu0 %v1370_v15 }
 0x359   : > { %2255 = vrcp.f32 %v1351_v62 }
 0x35b   : > { %v1354_v16 = vpop.xlane.xlu2 %1353  ;;  %v1282_v54 = vpop.xlane.xlu1 %1281 }
 0x35c   : > { %2257 = vrcp.f32 %v1354_v16  ;;  %v1302_v19 = vsub.f32 %v2756_v36, %v1282_v54 }
 0x35e   : > { %v2810_v25 = vpop.eup %2253  ;;  %v1331_v26 = vmul.f32 1.442695, %v1302_v19 }
 0x35f   : > { %v1373_v18 = vsel %vm1240_vm5, %v2810_v25, 0.0  ;;  %v2256_v20 = vpop.eup %2255 }
 0x360   : > { %2259 = vpow2.f32 %v1331_v26  ;;  %1374 = vadd.xlane.f32.xlu1 %v1373_v18  ;;  %v1405_v24 = vmul.f32 %v2256_v20, %v2750_v32 }
 0x362   : > { %v2258_v21 = vpop.eup %2257 }
 0x363   : > { %v1357_v22 = vpop.xlane.xlu2 %1356  ;;  %v1285_v23 = vpop.xlane.xlu1 %1284  ;;  %v1406_v27 = vmul.f32 %v2258_v21, %v2759_v43 }
 0x364   : > { %v1303_v28 = vsub.f32 %v2765_v53, %v1285_v23 }
 0x365   : > { %v1419_v29 = vpack.c.bf16 %v1406_v27, %v1405_v24 }
 0x366   : > { %v2260_v36 = vpop.eup %2259  ;;  %v1333_v30 = vmul.f32 1.442695, %v1303_v28 }
 0x367   : > { %2076 = vmatmul.msk.bf16.gmra.mxu2 %vm1240_vm5, %v1419_v29  ;;  %v1376_v31 = vsel %vm1240_vm5, %v2260_v36, 0.0 }
 0x368   : > { %2261 = vpow2.f32 %v1333_v30  ;;  %1377 = vadd.xlane.f32.xlu2 %v1376_v31 }
 0x369   : > { %2263 = vrcp.f32 %v1357_v22 }
 0x36b   : > { %v1360_v33 = vpop.xlane.xlu0 %1359  ;;  %v1288_v34 = vpop.xlane.xlu2 %1287 }
 0x36c   : > { %2265 = vrcp.f32 %v1360_v33  ;;  %v1304_v35 = vsub.f32 %v2774_v7, %v1288_v34 }
 0x36e   : > { %v2820_v32 = vpop.eup %2261  ;;  %v1335_v43 = vmul.f32 1.442695, %v1304_v35 }
 0x36f   : > { %v1379_v53 = vsel %vm1240_vm5, %v2820_v32, 0.0  ;;  %v2264_v37 = vpop.eup %2263 }
 0x370   : > { %2267 = vpow2.f32 %v1335_v43  ;;  %1380 = vadd.xlane.f32.xlu0 %v1379_v53  ;;  %v1407_v63 = vmul.f32 %v2264_v37, %v2768_v61 }
 0x372   : > { %v2266_v46 = vpop.eup %2265 }
 0x373   : > { %v1408_v47 = vmul.f32 %v2266_v46, %v2777_v10  ;;  %v1363_v55 = vpop.xlane.xlu0 %1362 }
 0x374   : > { %2269 = vrcp.f32 %v1363_v55 }
 0x375   : > { %v1420_v49 = vpack.c.bf16 %v1408_v47, %v1407_v63 }
 0x376   : > { %v2268_v6 = vpop.eup %2267 }
 0x377   : > { %2077 = vmatmul.msk.bf16.gmra.mxu2 %vm1240_vm5, %v1420_v49  ;;  %v1382_v7 = vsel %vm1240_vm5, %v2268_v6, 0.0 }
 0x378   : > { %1383 = vadd.xlane.f32.xlu1 %v1382_v7 }
 0x37a   : > { %v2270_v48 = vpop.eup %2269 }
 0x37b   : > { %v1409_v10 = vmul.f32 %v2270_v48, %v2783_v14 }
 0x3bb   : > { %v1366_v58 = vpop.xlane.xlu1 %1365 }
 0x3bc   : > { %2271 = vrcp.f32 %v1366_v58 }
 0x3c2   : > { %v2272_v61 = vpop.eup %2271 }
 0x3c3   : > { %v1410_v62 = vmul.f32 %v2272_v61, %v2791_v40  ;;  %v1369_v3 = vpop.xlane.xlu2 %1368 }
 0x3c4   : > { %2273 = vrcp.f32 %v1369_v3 }
 0x3c5   : > { %v1421_v2 = vpack.c.bf16 %v1410_v62, %v1409_v10 }
 0x3c7   : > { %2078 = vmatmul.msk.bf16.gmra.mxu2 %vm1240_vm5, %v1421_v2 }
 0x3ca   : > { %v1490_v8 = vpop.f32.mrf.mxu2  ;;  %v2274_v11 = vpop.eup %2273 }
 0x3cb   : > { %v1372_v50 = vpop.xlane.xlu0 %1371  ;;  %v1411_v54 = vmul.f32 %v2274_v11, %v2797_v12 }
 0x3cc   : > { %2275 = vrcp.f32 %v1372_v50 }
 0x3d2   : > { %v2276_v13 = vpop.eup %2275  ;;  %v1492_v15 = vpop.f32.mrf.mxu2 }
 0x3d3   : > { %v1530_v16 = vpack.c.bf16 %v1492_v15, %v1490_v8  ;;  %v1412_v19 = vmul.f32 %v2276_v13, %v2804_v17  ;;  %v1375_v40 = vpop.xlane.xlu1 %1374 }
 0x3d4   : > { %2277 = vrcp.f32 %v1375_v40 }
 0x3d5   : > { %2086 = vmatmul.msk.bf16.vlgmr.msra.gmra.mxu3 %vm1546_vm6, %v1530_v16  ;;  %v1422_v14 = vpack.c.bf16 %v1412_v19, %v1411_v54 }
 0x3d7   : > { %2079 = vmatmul.msk.bf16.gmra.mxu2 %vm1240_vm5, %v1422_v14 }
 0x3da   : > { %v1495_v26 = vpop.f32.mrf.mxu2  ;;  %v2278_v20 = vpop.eup %2277 }
 0x3db   : > { %v1378_v18 = vpop.xlane.xlu2 %1377  ;;  %v1413_v24 = vmul.f32 %v2278_v20, %v2810_v25 }
 0x3dc   : > { %2279 = vrcp.f32 %v1378_v18 }
 0x3e2   : > { %v2280_v21 = vpop.eup %2279  ;;  %v1497_v22 = vpop.f32.mrf.mxu2 }
 0x3e3   : > { %v1531_v23 = vpack.c.bf16 %v1497_v22, %v1495_v26  ;;  %v1414_v27 = vmul.f32 %v2280_v21, %v2260_v36  ;;  %v1381_v17 = vpop.xlane.xlu0 %1380 }
 0x3e4   : > { %2281 = vrcp.f32 %v1381_v17 }
 0x3e5   : > { %2087 = vmatmul.msk.bf16.gmra.mxu3 %vm1546_vm6, %v1531_v23  ;;  %v1423_v12 = vpack.c.bf16 %v1414_v27, %v1413_v24 }
 0x3e7   : > { %2080 = vmatmul.msk.bf16.gmra.mxu2 %vm1240_vm5, %v1423_v12 }
 0x3ea   : > { %v1500_v28 = vpop.f32.mrf.mxu2  ;;  %v2282_v30 = vpop.eup %2281 }
 0x3eb   : > { %v1384_v29 = vpop.xlane.xlu1 %1383  ;;  %v1415_v35 = vmul.f32 %v2282_v30, %v2820_v32  ;;  %v2846_v32 = vstv %s1620_s14 }
 0x3ec   : > { %2283 = vrcp.f32 %v1384_v29 }
 0x3f2   : > { %v2284_v31 = vpop.eup %2283  ;;  %v1502_v33 = vpop.f32.mrf.mxu2 }
 0x3f3   : > { %v1532_v34 = vpack.c.bf16 %v1502_v33, %v1500_v28  ;;  %v1416_v43 = vmul.f32 %v2284_v31, %v2268_v6 }
 0x3f5   : > { %2088 = vmatmul.msk.bf16.gmra.mxu3 %vm1546_vm6, %v1532_v34  ;;  %v1424_v25 = vpack.c.bf16 %v1416_v43, %v1415_v35 }
 0x3f7   : > { %2081 = vmatmul.msk.bf16.gmra.mxu2 %vm1240_vm5, %v1424_v25 }
 0x3fa   : > { %v1505_v36 = vpop.f32.mrf.mxu2 }
 0x402   : > { %v1507_v53 = vpop.f32.mrf.mxu2 }
 0x403   : > { %v1533_v37 = vpack.c.bf16 %v1507_v53, %v1505_v36 }
 0x405   : > { %2089 = vmatmul.msk.bf16.gmra.mxu3 %vm1546_vm6, %v1533_v37 }
 0x44a   : > { %v1510_v46 = vpop.f32.mrf.mxu2 }
 0x452   : > { %v1512_v63 = vpop.f32.mrf.mxu2 }
 0x453   : > { %v1534_v47 = vpack.c.bf16 %v1512_v63, %v1510_v46 }
 0x455   : > { %2090 = vmatmul.msk.bf16.gmra.mxu3 %vm1546_vm6, %v1534_v47 }
 0x458   : > { %v1580_v49 = vpop.f32.mrf.mxu3 }
 0x459   : > { %v1622_v6 = vmul.f32 %v2846_v32, %v1580_v49 }
 0x45a   : > { %v1515_v7 = vpop.f32.mrf.mxu2 }
 0x45b   : > { %v1638_v9 = vadd.f32 %v1622_v6, %v2619_v38 }
 0x45d   : > { %1654 = vst.msk [vmem:[%s2517_s20] sm:$0xff] %vm1044_vm3, %v1638_v9 }
 0x460   : > { %v1582_v55 = vpop.f32.mrf.mxu3 }
 0x461   : > { %v1623_v58 = vmul.f32 %v2846_v32, %v1582_v55 }
 0x462   : > { %v1517_v48 = vpop.f32.mrf.mxu2 }
 0x463   : > { %v1639_v61 = vadd.f32 %v1623_v58, %v2622_v39  ;;  %v1535_v10 = vpack.c.bf16 %v1517_v48, %v1515_v7 }
 0x465   : > { %1655 = vst.msk [vmem:[%s2517_s20 + $0x8] sm:$0xff] %vm1044_vm3, %v1639_v61  ;;  %2091 = vmatmul.msk.bf16.gmra.mxu3 %vm1546_vm6, %v1535_v10 }
 0x468   : > { %v1585_v62 = vpop.f32.mrf.mxu3 }
 0x469   : > { %v1624_v2 = vmul.f32 %v2846_v32, %v1585_v62 }
 0x46a   : > { %v1520_v3 = vpop.f32.mrf.mxu2 }
 0x46b   : > { %v1640_v38 = vadd.f32 %v1624_v2, %v2628_v41 }
 0x46d   : > { %1656 = vst.msk [vmem:[%s2517_s20 + $0x10] sm:$0xff] %vm1044_vm3, %v1640_v38 }
 0x470   : > { %v1587_v8 = vpop.f32.mrf.mxu3 }
 0x471   : > { %v1625_v50 = vmul.f32 %v2846_v32, %v1587_v8 }
 0x472   : > { %v1522_v11 = vpop.f32.mrf.mxu2 }
 0x473   : > { %v1641_v39 = vadd.f32 %v1625_v50, %v2631_v42  ;;  %v1536_v13 = vpack.c.bf16 %v1522_v11, %v1520_v3 }
 0x475   : > { %1657 = vst.msk [vmem:[%s2517_s20 + $0x18] sm:$0xff] %vm1044_vm3, %v1641_v39  ;;  %2092 = vmatmul.msk.bf16.gmra.mxu3 %vm1546_vm6, %v1536_v13 }
 0x478   : > { %v1590_v15 = vpop.f32.mrf.mxu3 }
 0x479   : > { %v1626_v16 = vmul.f32 %v2846_v32, %v1590_v15 }
 0x47a   : > { %v1525_v54 = vpop.f32.mrf.mxu2 }
 0x47b   : > { %v1642_v41 = vadd.f32 %v1626_v16, %v2637_v44 }
 0x47d   : > { %1658 = vst.msk [vmem:[%s2517_s20 + $0x20] sm:$0xff] %vm1044_vm3, %v1642_v41 }
 0x480   : > { %v1592_v19 = vpop.f32.mrf.mxu3 }
 0x481   : > { %v1627_v14 = vmul.f32 %v2846_v32, %v1592_v19 }
 0x482   : > { %v1527_v40 = vpop.f32.mrf.mxu2 }
 0x483   : > { %v1643_v42 = vadd.f32 %v1627_v14, %v2640_v45  ;;  %v1537_v26 = vpack.c.bf16 %v1527_v40, %v1525_v54 }
 0x485   : > { %1659 = vst.msk [vmem:[%s2517_s20 + $0x28] sm:$0xff] %vm1044_vm3, %v1643_v42  ;;  %2093 = vmatmul.msk.bf16.gmra.mxu3 %vm1546_vm6, %v1537_v26 }
 0x488   : > { %v1595_v18 = vpop.f32.mrf.mxu3 }
 0x489   : > { %v1628_v20 = vmul.f32 %v2846_v32, %v1595_v18 }
 0x48b   : > { %v1644_v44 = vadd.f32 %v1628_v20, %v2648_v51 }
 0x48d   : > { %1660 = vst.msk [vmem:[%s2517_s20 + $0x30] sm:$0xff] %vm1044_vm3, %v1644_v44 }
 0x490   : > { %v1597_v21 = vpop.f32.mrf.mxu3 }
 0x491   : > { %v1629_v22 = vmul.f32 %v2846_v32, %v1597_v21 }
 0x493   : > { %v1645_v23 = vadd.f32 %v1629_v22, %v2651_v52 }
 0x495   : > { %1661 = vst.msk [vmem:[%s2517_s20 + $0x38] sm:$0xff] %vm1044_vm3, %v1645_v23 }
 0x4d8   : > { %v1600_v45 = vpop.f32.mrf.mxu3 }
 0x4d9   : > { %v1630_v24 = vmul.f32 %v2846_v32, %v1600_v45 }
 0x4db   : > { %v1646_v27 = vadd.f32 %v1630_v24, %v2658_v56 }
 0x4dd   : > { %1662 = vst.msk [vmem:[%s2517_s20 + $0x40] sm:$0xff] %vm1044_vm3, %v1646_v27 }
 0x4e0   : > { %v1602_v51 = vpop.f32.mrf.mxu3 }
 0x4e1   : > { %v1631_v12 = vmul.f32 %v2846_v32, %v1602_v51 }
 0x4e3   : > { %v1647_v17 = vadd.f32 %v1631_v12, %v2661_v57 }
 0x4e5   : > { %1663 = vst.msk [vmem:[%s2517_s20 + $0x48] sm:$0xff] %vm1044_vm3, %v1647_v17 }
 0x4e8   : > { %v1605_v52 = vpop.f32.mrf.mxu3 }
 0x4e9   : > { %v1632_v28 = vmul.f32 %v2846_v32, %v1605_v52 }
 0x4eb   : > { %v1648_v29 = vadd.f32 %v1632_v28, %v2667_v59 }
 0x4ed   : > { %1664 = vst.msk [vmem:[%s2517_s20 + $0x50] sm:$0xff] %vm1044_vm3, %v1648_v29 }
 0x4f0   : > { %v1607_v56 = vpop.f32.mrf.mxu3 }
 0x4f1   : > { %v1633_v30 = vmul.f32 %v2846_v32, %v1607_v56 }
 0x4f3   : > { %v1649_v31 = vadd.f32 %v1633_v30, %v2670_v60 }
 0x4f5   : > { %1665 = vst.msk [vmem:[%s2517_s20 + $0x58] sm:$0xff] %vm1044_vm3, %v1649_v31 }
 0x4f8   : > { %v1610_v57 = vpop.f32.mrf.mxu3 }
 0x4f9   : > { %v1634_v33 = vmul.f32 %v2846_v32, %v1610_v57 }
 0x4fb   : > { %v1650_v34 = vadd.f32 %v1634_v33, %v2677_v0 }
 0x4fd   : > { %1666 = vst.msk [vmem:[%s2517_s20 + $0x60] sm:$0xff] %vm1044_vm3, %v1650_v34 }
 0x500   : > { %v1612_v35 = vpop.f32.mrf.mxu3 }
 0x501   : > { %v1635_v59 = vmul.f32 %v2846_v32, %v1612_v35 }
 0x503   : > { %v1651_v43 = vadd.f32 %v1635_v59, %v2680_v1 }
 0x505   : > { %1667 = vst.msk [vmem:[%s2517_s20 + $0x68] sm:$0xff] %vm1044_vm3, %v1651_v43 }
 0x508   : > { %v1615_v60 = vpop.f32.mrf.mxu3 }
 0x509   : > { %v1636_v25 = vmul.f32 %v2846_v32, %v1615_v60 }
 0x50b   : > { %v1652_v36 = vadd.f32 %v1636_v25, %v2686_v4 }
 0x50d   : > { %1668 = vst.msk [vmem:[%s2517_s20 + $0x70] sm:$0xff] %vm1044_vm3, %v1652_v36 }
 0x510   : > { %v1617_v0 = vpop.f32.mrf.mxu3 }
 0x511   : > { %v1637_v1 = vmul.f32 %v2846_v32, %v1617_v0 }
 0x513   : > { %v1653_v53 = vadd.f32 %v1637_v1, %v2689_v5 }
 0x515   : > { %1669 = vst.msk [vmem:[%s2517_s20 + $0x78] sm:$0xff] %vm1044_vm3, %v1653_v53 }
 0x516   : > { %2312 = shalt.err (!%p2309_p9)
}
 0x517   : > { %s2381_s20 = smov 128   ;;  %s2382_s14 = smov 8  }
 0x518   : > { %2148 = dma.vmem_to_hbm [thread:$0]  (%p2477_p3), %s1686_s12, 2048, %s1688_s30, %s1671_s28, %s2381_s20, %s2381_s20, %s2382_s14  }
 0x519 PF: > { %p2154_p10 = scmp.ge.s32.totalorder %s2379_s10, 2  ;;  %s1702_s17 = sand.u32 1, %s2351_s26  }
 0x51a   : > { %s1703_s18 = scalar_lea.sflag [#allocation6], %s1702_s17 }
 0x51b   : > { %p2151_p11 = pnand %p2154_p10, %p2486_p8 }
 0x51d   : > { %p2152_p12 = pneg %p2151_p11 }
 0x51f   : > { %2346 = dma.done.wait (%p2152_p12), %s1703_s18, 2048  }
 0x520   : > { %2348 = vsyncadd (%p2152_p12), %s1703_s18, 4294965248  ;;  %s21_s10 = sadd.s32 1, %s2379_s10   ;;  %s2984_s19 = sld [smem:[#allocation8_spill]] }
 0x521   : > { %p18_p13 = scmp.ge.s32.totalorder %s21_s10, 6   ;;  %s2985_s28 = sld [smem:[#allocation13_spill]] }
 0x522   : > { %s2986_s29 = sld [smem:[#allocation9_spill]]  ;;  %s2990_s26 = smov %s2355_s27 }
 0x523   : > { %s2987_s30 = sld [smem:[#allocation10_spill]]  ;;  %20 = sbr.rel (!%p18_p13) target bundleno = 7 (0x7), region = 93 }
 0x524   : > { %s2988_s8 = sld [smem:[#allocation11_spill]] }
 0x525   : > { %s2989_s9 = sld [smem:[#allocation12_spill]] }
 0x526   : > { %s2991_s27 = smov %s2984_s19 }
 0x528   :  { %1709 = vsyncpa [#allocation6], 1 }
 0x529   :  { %1711 = vsyncpa [#allocation6 + $0x1], 1 }

</bundles_post_ra>
